<compile_context>
chip_gen: v6e
topology: v6e:2x2x1
jax: 0.10.0
libtpu: 0.0.40
codegen_flags: <defaults>
</compile_context>

<pallas_src>
import functools

import jax
import jax.numpy as jnp
from jax.experimental import pallas as pl
from jax.experimental.pallas import tpu as pltpu

_INV_SQRT2 = 0.7071067811865476
_NUM_LAYERS = 4


def _fused_model_kernel(x_ref, w_ref, b_ref, mask_ref, o_ref, act_ref,
                        *, C, H, W):
    """Fused 4-layer ConvBn+ReLU(+GELU) forward for one image.

    x_ref    : (1, C, L)       flat padded input (zero halo + margins), VMEM
    w_ref    : (4, C, 9*C)     folded conv*BN weight matrices, VMEM
    b_ref    : (4, C, 1)       folded biases, VMEM
    mask_ref : (1, P)          1.0 on the HxW interior of the padded domain
    o_ref    : (1, C, P)       padded-domain output slab (lane-dense store)
    act_ref  : (C, L)          flat padded activation scratch, VMEM
    """
    Hp, Wp = H + 2, W + 2
    P = Hp * Wp          # flattened padded image length
    M = Wp + 1           # flat margin so every shifted slice stays in-bounds

    # Margins and halo are already zero (wrapper pads once); no in-kernel
    # full-buffer zeroing needed.
    act_ref[...] = x_ref[0].astype(jnp.float32)
    interior = mask_ref[...]                                   # (1, P)

    for layer in range(_NUM_LAYERS):
        # --- im2col via the flat-shift trick --------------------------------
        # Each of the nine 3x3 taps is a contiguous lane-slice of the flat
        # padded row, taken for all C channels at once -> (9*C, P).
        pieces = []
        for dh in (-1, 0, 1):
            for dw in (-1, 0, 1):
                s = M + dh * Wp + dw
                pieces.append(act_ref[:, s:s + P])             # (C, P)
        patches = jnp.concatenate(pieces, axis=0)              # (9*C, P)

        # --- conv + folded BN: one MXU matmul per layer ---------------------
        y = jnp.dot(w_ref[layer], patches,
                    preferred_element_type=jnp.float32,
                    precision=jax.lax.Precision.HIGHEST)       # (C, P)
        y = y + b_ref[layer]                                   # (C,1) bias
        y = jnp.maximum(y, 0.0)                                # ReLU

        if layer < _NUM_LAYERS - 1:
            # exact-erf GELU: 0.5*y * (erf(y/sqrt(2)) + 1)
            y = (y * 0.5) * (jax.lax.erf(y * _INV_SQRT2) + 1.0)
            # Re-zero the halo so the next conv sees zero padding; the flat
            # margins are never written and stay zero.
            act_ref[:, M:M + P] = y * interior
        else:
            # Single lane-dense slab store; wrapper slices out the interior.
            o_ref[0] = y.astype(o_ref.dtype)


def model_forward(x, params):
    """Full 4-block forward in a single fused Pallas kernel."""
    N, C, H, W = x.shape
    Hp, Wp = H + 2, W + 2
    P = Hp * Wp
    M = Wp + 1
    L = P + 2 * M

    # Fold each layer's conv*BN into a (C, 9*C) matrix whose column order
    # ((kh*3 + kw)*C + ci) matches the kernel's patch stacking.
    w_all = jnp.stack([jnp.transpose(w, (0, 2, 3, 1)).reshape(C, 9 * C)
                       for (w, _) in params])                  # (4, C, 9*C)
    b_all = jnp.stack([b.reshape(C, 1) for (_, b) in params])  # (4, C, 1)

    # Lane-dense flat layout with zero halo + flat margins, built once here.
    xp = jnp.pad(x.astype(jnp.float32), ((0, 0), (0, 0), (1, 1), (1, 1)))
    x_flat = jnp.pad(xp.reshape(N, C, P), ((0, 0), (0, 0), (M, M)))  # (N,C,L)

    interior = jnp.zeros((Hp, Wp), jnp.float32).at[1:H + 1, 1:W + 1].set(1.0)
    interior = interior.reshape(1, P)

    kernel = functools.partial(_fused_model_kernel, C=C, H=H, W=W)
    cost = pl.CostEstimate(
        flops=_NUM_LAYERS * 2 * C * (9 * C) * N * P,
        transcendentals=(_NUM_LAYERS - 1) * N * C * P,
        bytes_accessed=(x_flat.size + N * C * P + w_all.size + b_all.size) * 4,
    )

    out_flat = pl.pallas_call(
        kernel,
        out_shape=jax.ShapeDtypeStruct((N, C, P), x.dtype),
        grid=(N,),
        in_specs=[
            pl.BlockSpec((1, C, L), lambda n: (n, 0, 0)),            # x
            pl.BlockSpec((_NUM_LAYERS, C, 9 * C), lambda n: (0, 0, 0)),
            pl.BlockSpec((_NUM_LAYERS, C, 1), lambda n: (0, 0, 0)),
            pl.BlockSpec((1, P), lambda n: (0, 0)),                  # mask
        ],
        out_specs=pl.BlockSpec((1, C, P), lambda n: (n, 0, 0)),
        scratch_shapes=[pltpu.VMEM((C, L), jnp.float32)],
        compiler_params=pltpu.CompilerParams(
            dimension_semantics=("parallel",)),
        cost_estimate=cost,
    )(x_flat, w_all, b_all, interior)

    # Discard the (garbage) halo of the last layer's padded-domain result.
    return out_flat.reshape(N, C, Hp, Wp)[:, :, 1:H + 1, 1:W + 1]


def make_convbn_params(key, c):
    """Deterministic Conv2d + BatchNorm2d params, folded (eval-mode BN)."""
    k = jax.random.split(key, 6)
    conv_w = 0.2 * jax.random.normal(k[0], (c, c, 3, 3), jnp.float32)
    conv_b = 0.1 * jax.random.normal(k[1], (c,), jnp.float32)
    gamma = 1.0 + 0.1 * jax.random.normal(k[2], (c,), jnp.float32)
    beta = 0.1 * jax.random.normal(k[3], (c,), jnp.float32)
    r_mean = 0.1 * jax.random.normal(k[4], (c,), jnp.float32)
    r_var = 1.0 + 0.1 * jnp.abs(jax.random.normal(k[5], (c,), jnp.float32))
    eps = 1e-5
    scale = gamma / jnp.sqrt(r_var + eps)
    w_eff = conv_w * scale[:, None, None, None]
    b_eff = (conv_b - r_mean) * scale + beta
    return w_eff, b_eff


def _reference_block(x, w_eff, b_eff, apply_gelu):
    y = jax.lax.conv_general_dilated(
        x, w_eff, window_strides=(1, 1), padding=((1, 1), (1, 1)),
        dimension_numbers=("NCHW", "OIHW", "NCHW"))
    y = y + b_eff[None, :, None, None]
    y = jnp.maximum(y, 0.0)
    if apply_gelu:
        y = (y * 0.5) * (jax.lax.erf(y * _INV_SQRT2) + 1.0)
    return y


if __name__ == "__main__":
    key = jax.random.PRNGKey(0)
    kx, kp = jax.random.split(key)

    N, C, H, W = 2, 3, 16, 16          # channels fixed at 3 by the module
    x1 = jax.random.normal(kx, (N, C, H, W), jnp.float32)

    pkeys = jax.random.split(kp, _NUM_LAYERS)
    params = [make_convbn_params(pkeys[i], C) for i in range(_NUM_LAYERS)]

    out = model_forward(x1, params)
    out = jax.block_until_ready(out)

    # Sanity check against a pure-JAX reference (structural check; tolerance
    # leaves headroom for MXU matmul precision).
    ref = x1
    for i in range(_NUM_LAYERS):
        ref = _reference_block(ref, params[i][0], params[i][1],
                               apply_gelu=(i < _NUM_LAYERS - 1))
    assert out.shape == (N, C, H, W)
    assert jnp.allclose(out, ref, atol=1e-2, rtol=1e-2), \
        float(jnp.max(jnp.abs(out - ref)))

    print("KERNEL_OK")
</pallas_src>

<mosaic_0001>
module attributes {stable_mosaic.version = 11 : i64} {
  func.func @_fused_model_kernel(%arg0: i32, %arg1: memref<1x3x362xf32, #tpu.memory_space<vmem>>, %arg2: memref<4x3x27xf32, #tpu.memory_space<vmem>>, %arg3: memref<4x3x1xf32, #tpu.memory_space<vmem>>, %arg4: memref<1x324xf32, #tpu.memory_space<vmem>>, %arg5: memref<1x3x324xf32, #tpu.memory_space<vmem>>, %arg6: memref<3x362xf32, #tpu.memory_space<vmem>>) attributes {dimension_semantics = [#tpu.dimension_semantics<parallel>], iteration_bounds = array<i64: 2>, scalar_prefetch = 0 : i64, scratch_operands = 1 : i64, tpu.core_type = #tpu.core_type<tc>, window_params = [{transform_indices = @transform_0, window_bounds = array<i64: 1, 3, 362>}, {pipeline_mode = #tpu.pipeline_mode<synchronous>, transform_indices = @transform_1, window_bounds = array<i64: 4, 3, 27>}, {pipeline_mode = #tpu.pipeline_mode<synchronous>, transform_indices = @transform_2, window_bounds = array<i64: 4, 3, 1>}, {pipeline_mode = #tpu.pipeline_mode<synchronous>, transform_indices = @transform_3, window_bounds = array<i64: 1, 324>}, {transform_indices = @transform_4, window_bounds = array<i64: 1, 3, 324>}]} {
    %c0 = arith.constant 0 : index
    %c0_0 = arith.constant 0 : index
    %c0_1 = arith.constant 0 : index
    %0 = vector.load %arg1[%c0, %c0_0, %c0_1] : memref<1x3x362xf32, #tpu.memory_space<vmem>>, vector<1x3x362xf32>
    %1 = vector.shape_cast %0 : vector<1x3x362xf32> to vector<3x362xf32>
    %c0_2 = arith.constant 0 : index
    %c0_3 = arith.constant 0 : index
    %2 = vector.load %arg6[%c0_2, %c0_3] : memref<3x362xf32, #tpu.memory_space<vmem>>, vector<3x362xf32>
    tpu.vector_store %arg6[%c0_2, %c0_3], %1 {strides = array<i32>} : memref<3x362xf32, #tpu.memory_space<vmem>>, vector<3x362xf32>,
    %c0_4 = arith.constant 0 : index
    %c0_5 = arith.constant 0 : index
    %3 = vector.load %arg4[%c0_4, %c0_5] : memref<1x324xf32, #tpu.memory_space<vmem>>, vector<1x324xf32>
    %c0_6 = arith.constant 0 : index
    %c0_7 = arith.constant 0 : index
    %4 = vector.load %arg6[%c0_6, %c0_7] : memref<3x362xf32, #tpu.memory_space<vmem>>, vector<3x324xf32>
    %c0_8 = arith.constant 0 : index
    %c1 = arith.constant 1 : index
    %5 = vector.load %arg6[%c0_8, %c1] : memref<3x362xf32, #tpu.memory_space<vmem>>, vector<3x324xf32>
    %c0_9 = arith.constant 0 : index
    %c2 = arith.constant 2 : index
    %6 = vector.load %arg6[%c0_9, %c2] : memref<3x362xf32, #tpu.memory_space<vmem>>, vector<3x324xf32>
    %c0_10 = arith.constant 0 : index
    %c18 = arith.constant 18 : index
    %7 = vector.load %arg6[%c0_10, %c18] : memref<3x362xf32, #tpu.memory_space<vmem>>, vector<3x324xf32>
    %c0_11 = arith.constant 0 : index
    %c19 = arith.constant 19 : index
    %8 = vector.load %arg6[%c0_11, %c19] : memref<3x362xf32, #tpu.memory_space<vmem>>, vector<3x324xf32>
    %c0_12 = arith.constant 0 : index
    %c20 = arith.constant 20 : index
    %9 = vector.load %arg6[%c0_12, %c20] : memref<3x362xf32, #tpu.memory_space<vmem>>, vector<3x324xf32>
    %c0_13 = arith.constant 0 : index
    %c36 = arith.constant 36 : index
    %10 = vector.load %arg6[%c0_13, %c36] : memref<3x362xf32, #tpu.memory_space<vmem>>, vector<3x324xf32>
    %c0_14 = arith.constant 0 : index
    %c37 = arith.constant 37 : index
    %11 = vector.load %arg6[%c0_14, %c37] : memref<3x362xf32, #tpu.memory_space<vmem>>, vector<3x324xf32>
    %c0_15 = arith.constant 0 : index
    %c38 = arith.constant 38 : index
    %12 = vector.load %arg6[%c0_15, %c38] : memref<3x362xf32, #tpu.memory_space<vmem>>, vector<3x324xf32>
    %13 = tpu.concatenate %4, %5, %6, %7, %8, %9, %10, %11, %12 in 0 : vector<3x324xf32>, vector<3x324xf32>, vector<3x324xf32>, vector<3x324xf32>, vector<3x324xf32>, vector<3x324xf32>, vector<3x324xf32>, vector<3x324xf32>, vector<3x324xf32> -> vector<27x324xf32>
    %c0_16 = arith.constant 0 : index
    %c0_17 = arith.constant 0 : index
    %c0_18 = arith.constant 0 : index
    %14 = vector.load %arg2[%c0_16, %c0_17, %c0_18] : memref<4x3x27xf32, #tpu.memory_space<vmem>>, vector<1x3x27xf32>
    %15 = vector.shape_cast %14 : vector<1x3x27xf32> to vector<3x27xf32>
    %cst = arith.constant dense<0.000000e+00> : vector<3x324xf32>
    %16 = tpu.matmul %15, %13, %cst {dimension_numbers = #tpu.dot_dimension_numbers<[1], [0], [0], [1], [0, 0, 1, 1], [], []>, precision = #tpu.contract_precision<fp32>} : vector<3x27xf32>, vector<27x324xf32>, vector<3x324xf32> -> vector<3x324xf32>
    %c0_19 = arith.constant 0 : index
    %c0_20 = arith.constant 0 : index
    %c0_21 = arith.constant 0 : index
    %17 = vector.load %arg3[%c0_19, %c0_20, %c0_21] : memref<4x3x1xf32, #tpu.memory_space<vmem>>, vector<1x3x1xf32>
    %18 = vector.shape_cast %17 : vector<1x3x1xf32> to vector<3x1xf32>
    %19 = vector.broadcast %18 : vector<3x1xf32> to vector<3x324xf32>
    %20 = arith.addf %16, %19 : vector<3x324xf32>
    %cst_22 = arith.constant 0.000000e+00 : f32
    %21 = vector.broadcast %cst_22 : f32 to vector<3x324xf32>
    %22 = arith.maximumf %20, %21 : vector<3x324xf32>
    %cst_23 = arith.constant 5.000000e-01 : f32
    %23 = vector.broadcast %cst_23 : f32 to vector<3x324xf32>
    %24 = arith.mulf %22, %23 : vector<3x324xf32>
    %cst_24 = arith.constant 0.707106769 : f32
    %25 = vector.broadcast %cst_24 : f32 to vector<3x324xf32>
    %26 = arith.mulf %22, %25 : vector<3x324xf32>
    %27 = math.erf %26 : vector<3x324xf32>
    %cst_25 = arith.constant 1.000000e+00 : f32
    %28 = vector.broadcast %cst_25 : f32 to vector<3x324xf32>
    %29 = arith.addf %27, %28 : vector<3x324xf32>
    %30 = arith.mulf %24, %29 : vector<3x324xf32>
    %31 = vector.broadcast %3 : vector<1x324xf32> to vector<3x324xf32>
    %32 = arith.mulf %30, %31 : vector<3x324xf32>
    %c0_26 = arith.constant 0 : index
    %c19_27 = arith.constant 19 : index
    %33 = vector.load %arg6[%c0_26, %c19_27] : memref<3x362xf32, #tpu.memory_space<vmem>>, vector<3x324xf32>
    tpu.vector_store %arg6[%c0_26, %c19_27], %32 {strides = array<i32>} : memref<3x362xf32, #tpu.memory_space<vmem>>, vector<3x324xf32>,
    %c0_28 = arith.constant 0 : index
    %c0_29 = arith.constant 0 : index
    %34 = vector.load %arg6[%c0_28, %c0_29] : memref<3x362xf32, #tpu.memory_space<vmem>>, vector<3x324xf32>
    %c0_30 = arith.constant 0 : index
    %c1_31 = arith.constant 1 : index
    %35 = vector.load %arg6[%c0_30, %c1_31] : memref<3x362xf32, #tpu.memory_space<vmem>>, vector<3x324xf32>
    %c0_32 = arith.constant 0 : index
    %c2_33 = arith.constant 2 : index
    %36 = vector.load %arg6[%c0_32, %c2_33] : memref<3x362xf32, #tpu.memory_space<vmem>>, vector<3x324xf32>
    %c0_34 = arith.constant 0 : index
    %c18_35 = arith.constant 18 : index
    %37 = vector.load %arg6[%c0_34, %c18_35] : memref<3x362xf32, #tpu.memory_space<vmem>>, vector<3x324xf32>
    %c0_36 = arith.constant 0 : index
    %c19_37 = arith.constant 19 : index
    %38 = vector.load %arg6[%c0_36, %c19_37] : memref<3x362xf32, #tpu.memory_space<vmem>>, vector<3x324xf32>
    %c0_38 = arith.constant 0 : index
    %c20_39 = arith.constant 20 : index
    %39 = vector.load %arg6[%c0_38, %c20_39] : memref<3x362xf32, #tpu.memory_space<vmem>>, vector<3x324xf32>
    %c0_40 = arith.constant 0 : index
    %c36_41 = arith.constant 36 : index
    %40 = vector.load %arg6[%c0_40, %c36_41] : memref<3x362xf32, #tpu.memory_space<vmem>>, vector<3x324xf32>
    %c0_42 = arith.constant 0 : index
    %c37_43 = arith.constant 37 : index
    %41 = vector.load %arg6[%c0_42, %c37_43] : memref<3x362xf32, #tpu.memory_space<vmem>>, vector<3x324xf32>
    %c0_44 = arith.constant 0 : index
    %c38_45 = arith.constant 38 : index
    %42 = vector.load %arg6[%c0_44, %c38_45] : memref<3x362xf32, #tpu.memory_space<vmem>>, vector<3x324xf32>
    %43 = tpu.concatenate %34, %35, %36, %37, %38, %39, %40, %41, %42 in 0 : vector<3x324xf32>, vector<3x324xf32>, vector<3x324xf32>, vector<3x324xf32>, vector<3x324xf32>, vector<3x324xf32>, vector<3x324xf32>, vector<3x324xf32>, vector<3x324xf32> -> vector<27x324xf32>
    %c1_46 = arith.constant 1 : index
    %c0_47 = arith.constant 0 : index
    %c0_48 = arith.constant 0 : index
    %44 = vector.load %arg2[%c1_46, %c0_47, %c0_48] : memref<4x3x27xf32, #tpu.memory_space<vmem>>, vector<1x3x27xf32>
    %45 = vector.shape_cast %44 : vector<1x3x27xf32> to vector<3x27xf32>
    %cst_49 = arith.constant dense<0.000000e+00> : vector<3x324xf32>
    %46 = tpu.matmul %45, %43, %cst_49 {dimension_numbers = #tpu.dot_dimension_numbers<[1], [0], [0], [1], [0, 0, 1, 1], [], []>, precision = #tpu.contract_precision<fp32>} : vector<3x27xf32>, vector<27x324xf32>, vector<3x324xf32> -> vector<3x324xf32>
    %c1_50 = arith.constant 1 : index
    %c0_51 = arith.constant 0 : index
    %c0_52 = arith.constant 0 : index
    %47 = vector.load %arg3[%c1_50, %c0_51, %c0_52] : memref<4x3x1xf32, #tpu.memory_space<vmem>>, vector<1x3x1xf32>
    %48 = vector.shape_cast %47 : vector<1x3x1xf32> to vector<3x1xf32>
    %49 = vector.broadcast %48 : vector<3x1xf32> to vector<3x324xf32>
    %50 = arith.addf %46, %49 : vector<3x324xf32>
    %cst_53 = arith.constant 0.000000e+00 : f32
    %51 = vector.broadcast %cst_53 : f32 to vector<3x324xf32>
    %52 = arith.maximumf %50, %51 : vector<3x324xf32>
    %cst_54 = arith.constant 5.000000e-01 : f32
    %53 = vector.broadcast %cst_54 : f32 to vector<3x324xf32>
    %54 = arith.mulf %52, %53 : vector<3x324xf32>
    %cst_55 = arith.constant 0.707106769 : f32
    %55 = vector.broadcast %cst_55 : f32 to vector<3x324xf32>
    %56 = arith.mulf %52, %55 : vector<3x324xf32>
    %57 = math.erf %56 : vector<3x324xf32>
    %cst_56 = arith.constant 1.000000e+00 : f32
    %58 = vector.broadcast %cst_56 : f32 to vector<3x324xf32>
    %59 = arith.addf %57, %58 : vector<3x324xf32>
    %60 = arith.mulf %54, %59 : vector<3x324xf32>
    %61 = vector.broadcast %3 : vector<1x324xf32> to vector<3x324xf32>
    %62 = arith.mulf %60, %61 : vector<3x324xf32>
    %c0_57 = arith.constant 0 : index
    %c19_58 = arith.constant 19 : index
    %63 = vector.load %arg6[%c0_57, %c19_58] : memref<3x362xf32, #tpu.memory_space<vmem>>, vector<3x324xf32>
    tpu.vector_store %arg6[%c0_57, %c19_58], %62 {strides = array<i32>} : memref<3x362xf32, #tpu.memory_space<vmem>>, vector<3x324xf32>,
    %c0_59 = arith.constant 0 : index
    %c0_60 = arith.constant 0 : index
    %64 = vector.load %arg6[%c0_59, %c0_60] : memref<3x362xf32, #tpu.memory_space<vmem>>, vector<3x324xf32>
    %c0_61 = arith.constant 0 : index
    %c1_62 = arith.constant 1 : index
    %65 = vector.load %arg6[%c0_61, %c1_62] : memref<3x362xf32, #tpu.memory_space<vmem>>, vector<3x324xf32>
    %c0_63 = arith.constant 0 : index
    %c2_64 = arith.constant 2 : index
    %66 = vector.load %arg6[%c0_63, %c2_64] : memref<3x362xf32, #tpu.memory_space<vmem>>, vector<3x324xf32>
    %c0_65 = arith.constant 0 : index
    %c18_66 = arith.constant 18 : index
    %67 = vector.load %arg6[%c0_65, %c18_66] : memref<3x362xf32, #tpu.memory_space<vmem>>, vector<3x324xf32>
    %c0_67 = arith.constant 0 : index
    %c19_68 = arith.constant 19 : index
    %68 = vector.load %arg6[%c0_67, %c19_68] : memref<3x362xf32, #tpu.memory_space<vmem>>, vector<3x324xf32>
    %c0_69 = arith.constant 0 : index
    %c20_70 = arith.constant 20 : index
    %69 = vector.load %arg6[%c0_69, %c20_70] : memref<3x362xf32, #tpu.memory_space<vmem>>, vector<3x324xf32>
    %c0_71 = arith.constant 0 : index
    %c36_72 = arith.constant 36 : index
    %70 = vector.load %arg6[%c0_71, %c36_72] : memref<3x362xf32, #tpu.memory_space<vmem>>, vector<3x324xf32>
    %c0_73 = arith.constant 0 : index
    %c37_74 = arith.constant 37 : index
    %71 = vector.load %arg6[%c0_73, %c37_74] : memref<3x362xf32, #tpu.memory_space<vmem>>, vector<3x324xf32>
    %c0_75 = arith.constant 0 : index
    %c38_76 = arith.constant 38 : index
    %72 = vector.load %arg6[%c0_75, %c38_76] : memref<3x362xf32, #tpu.memory_space<vmem>>, vector<3x324xf32>
    %73 = tpu.concatenate %64, %65, %66, %67, %68, %69, %70, %71, %72 in 0 : vector<3x324xf32>, vector<3x324xf32>, vector<3x324xf32>, vector<3x324xf32>, vector<3x324xf32>, vector<3x324xf32>, vector<3x324xf32>, vector<3x324xf32>, vector<3x324xf32> -> vector<27x324xf32>
    %c2_77 = arith.constant 2 : index
    %c0_78 = arith.constant 0 : index
    %c0_79 = arith.constant 0 : index
    %74 = vector.load %arg2[%c2_77, %c0_78, %c0_79] : memref<4x3x27xf32, #tpu.memory_space<vmem>>, vector<1x3x27xf32>
    %75 = vector.shape_cast %74 : vector<1x3x27xf32> to vector<3x27xf32>
    %cst_80 = arith.constant dense<0.000000e+00> : vector<3x324xf32>
    %76 = tpu.matmul %75, %73, %cst_80 {dimension_numbers = #tpu.dot_dimension_numbers<[1], [0], [0], [1], [0, 0, 1, 1], [], []>, precision = #tpu.contract_precision<fp32>} : vector<3x27xf32>, vector<27x324xf32>, vector<3x324xf32> -> vector<3x324xf32>
    %c2_81 = arith.constant 2 : index
    %c0_82 = arith.constant 0 : index
    %c0_83 = arith.constant 0 : index
    %77 = vector.load %arg3[%c2_81, %c0_82, %c0_83] : memref<4x3x1xf32, #tpu.memory_space<vmem>>, vector<1x3x1xf32>
    %78 = vector.shape_cast %77 : vector<1x3x1xf32> to vector<3x1xf32>
    %79 = vector.broadcast %78 : vector<3x1xf32> to vector<3x324xf32>
    %80 = arith.addf %76, %79 : vector<3x324xf32>
    %cst_84 = arith.constant 0.000000e+00 : f32
    %81 = vector.broadcast %cst_84 : f32 to vector<3x324xf32>
    %82 = arith.maximumf %80, %81 : vector<3x324xf32>
    %cst_85 = arith.constant 5.000000e-01 : f32
    %83 = vector.broadcast %cst_85 : f32 to vector<3x324xf32>
    %84 = arith.mulf %82, %83 : vector<3x324xf32>
    %cst_86 = arith.constant 0.707106769 : f32
    %85 = vector.broadcast %cst_86 : f32 to vector<3x324xf32>
    %86 = arith.mulf %82, %85 : vector<3x324xf32>
    %87 = math.erf %86 : vector<3x324xf32>
    %cst_87 = arith.constant 1.000000e+00 : f32
    %88 = vector.broadcast %cst_87 : f32 to vector<3x324xf32>
    %89 = arith.addf %87, %88 : vector<3x324xf32>
    %90 = arith.mulf %84, %89 : vector<3x324xf32>
    %91 = vector.broadcast %3 : vector<1x324xf32> to vector<3x324xf32>
    %92 = arith.mulf %90, %91 : vector<3x324xf32>
    %c0_88 = arith.constant 0 : index
    %c19_89 = arith.constant 19 : index
    %93 = vector.load %arg6[%c0_88, %c19_89] : memref<3x362xf32, #tpu.memory_space<vmem>>, vector<3x324xf32>
    tpu.vector_store %arg6[%c0_88, %c19_89], %92 {strides = array<i32>} : memref<3x362xf32, #tpu.memory_space<vmem>>, vector<3x324xf32>,
    %c0_90 = arith.constant 0 : index
    %c0_91 = arith.constant 0 : index
    %94 = vector.load %arg6[%c0_90, %c0_91] : memref<3x362xf32, #tpu.memory_space<vmem>>, vector<3x324xf32>
    %c0_92 = arith.constant 0 : index
    %c1_93 = arith.constant 1 : index
    %95 = vector.load %arg6[%c0_92, %c1_93] : memref<3x362xf32, #tpu.memory_space<vmem>>, vector<3x324xf32>
    %c0_94 = arith.constant 0 : index
    %c2_95 = arith.constant 2 : index
    %96 = vector.load %arg6[%c0_94, %c2_95] : memref<3x362xf32, #tpu.memory_space<vmem>>, vector<3x324xf32>
    %c0_96 = arith.constant 0 : index
    %c18_97 = arith.constant 18 : index
    %97 = vector.load %arg6[%c0_96, %c18_97] : memref<3x362xf32, #tpu.memory_space<vmem>>, vector<3x324xf32>
    %c0_98 = arith.constant 0 : index
    %c19_99 = arith.constant 19 : index
    %98 = vector.load %arg6[%c0_98, %c19_99] : memref<3x362xf32, #tpu.memory_space<vmem>>, vector<3x324xf32>
    %c0_100 = arith.constant 0 : index
    %c20_101 = arith.constant 20 : index
    %99 = vector.load %arg6[%c0_100, %c20_101] : memref<3x362xf32, #tpu.memory_space<vmem>>, vector<3x324xf32>
    %c0_102 = arith.constant 0 : index
    %c36_103 = arith.constant 36 : index
    %100 = vector.load %arg6[%c0_102, %c36_103] : memref<3x362xf32, #tpu.memory_space<vmem>>, vector<3x324xf32>
    %c0_104 = arith.constant 0 : index
    %c37_105 = arith.constant 37 : index
    %101 = vector.load %arg6[%c0_104, %c37_105] : memref<3x362xf32, #tpu.memory_space<vmem>>, vector<3x324xf32>
    %c0_106 = arith.constant 0 : index
    %c38_107 = arith.constant 38 : index
    %102 = vector.load %arg6[%c0_106, %c38_107] : memref<3x362xf32, #tpu.memory_space<vmem>>, vector<3x324xf32>
    %103 = tpu.concatenate %94, %95, %96, %97, %98, %99, %100, %101, %102 in 0 : vector<3x324xf32>, vector<3x324xf32>, vector<3x324xf32>, vector<3x324xf32>, vector<3x324xf32>, vector<3x324xf32>, vector<3x324xf32>, vector<3x324xf32>, vector<3x324xf32> -> vector<27x324xf32>
    %c3 = arith.constant 3 : index
    %c0_108 = arith.constant 0 : index
    %c0_109 = arith.constant 0 : index
    %104 = vector.load %arg2[%c3, %c0_108, %c0_109] : memref<4x3x27xf32, #tpu.memory_space<vmem>>, vector<1x3x27xf32>
    %105 = vector.shape_cast %104 : vector<1x3x27xf32> to vector<3x27xf32>
    %cst_110 = arith.constant dense<0.000000e+00> : vector<3x324xf32>
    %106 = tpu.matmul %105, %103, %cst_110 {dimension_numbers = #tpu.dot_dimension_numbers<[1], [0], [0], [1], [0, 0, 1, 1], [], []>, precision = #tpu.contract_precision<fp32>} : vector<3x27xf32>, vector<27x324xf32>, vector<3x324xf32> -> vector<3x324xf32>
    %c3_111 = arith.constant 3 : index
    %c0_112 = arith.constant 0 : index
    %c0_113 = arith.constant 0 : index
    %107 = vector.load %arg3[%c3_111, %c0_112, %c0_113] : memref<4x3x1xf32, #tpu.memory_space<vmem>>, vector<1x3x1xf32>
    %108 = vector.shape_cast %107 : vector<1x3x1xf32> to vector<3x1xf32>
    %109 = vector.broadcast %108 : vector<3x1xf32> to vector<3x324xf32>
    %110 = arith.addf %106, %109 : vector<3x324xf32>
    %cst_114 = arith.constant 0.000000e+00 : f32
    %111 = vector.broadcast %cst_114 : f32 to vector<3x324xf32>
    %112 = arith.maximumf %110, %111 : vector<3x324xf32>
    %c0_115 = arith.constant 0 : index
    %c0_116 = arith.constant 0 : index
    %c0_117 = arith.constant 0 : index
    %113 = vector.load %arg5[%c0_115, %c0_116, %c0_117] : memref<1x3x324xf32, #tpu.memory_space<vmem>>, vector<1x3x324xf32>
    %114 = vector.shape_cast %113 : vector<1x3x324xf32> to vector<3x324xf32>
    %115 = vector.shape_cast %112 : vector<3x324xf32> to vector<1x3x324xf32>
    tpu.vector_store %arg5[%c0_115, %c0_116, %c0_117], %115 {strides = array<i32>} : memref<1x3x324xf32, #tpu.memory_space<vmem>>, vector<1x3x324xf32>,
    return
  }
  func.func @transform_0(%arg0: i32) -> (i32, i32, i32) {
    %c0_i32 = arith.constant 0 : i32
    %c0_i32_0 = arith.constant 0 : i32
    %c0_i32_1 = arith.constant 0 : i32
    return %arg0, %c0_i32, %c0_i32_0 : i32, i32, i32
  }
  func.func @transform_1(%arg0: i32) -> (i32, i32, i32) {
    %c0_i32 = arith.constant 0 : i32
    %c0_i32_0 = arith.constant 0 : i32
    %c0_i32_1 = arith.constant 0 : i32
    %c0_i32_2 = arith.constant 0 : i32
    return %c0_i32, %c0_i32_0, %c0_i32_1 : i32, i32, i32
  }
  func.func @transform_2(%arg0: i32) -> (i32, i32, i32) {
    %c0_i32 = arith.constant 0 : i32
    %c0_i32_0 = arith.constant 0 : i32
    %c0_i32_1 = arith.constant 0 : i32
    %c0_i32_2 = arith.constant 0 : i32
    return %c0_i32, %c0_i32_0, %c0_i32_1 : i32, i32, i32
  }
  func.func @transform_3(%arg0: i32) -> (i32, i32) {
    %c0_i32 = arith.constant 0 : i32
    %c0_i32_0 = arith.constant 0 : i32
    %c0_i32_1 = arith.constant 0 : i32
    return %c0_i32, %c0_i32_0 : i32, i32
  }
  func.func @transform_4(%arg0: i32) -> (i32, i32, i32) {
    %c0_i32 = arith.constant 0 : i32
    %c0_i32_0 = arith.constant 0 : i32
    %c0_i32_1 = arith.constant 0 : i32
    return %arg0, %c0_i32, %c0_i32_0 : i32, i32, i32
  }
}

</mosaic_0001>

<bundles_post_ra>
// kernel: tpu_custom_call.1
= control target key start
LH: loop header
LB: loop body
LE: loop exit
PB: predicated region body
PF: predicated region fallthrough
CT: control target
= control target key end

     0   :  { %s5618_s15 = smov 0   ;;  %s7085_s0 = inlined_call_operand.vmem [shape: f32[2,3,362], index: 0, kind: input, shape index: {}]   ;;  %s7086_s1 = inlined_call_operand.vmem [shape: f32[4,3,27], index: 1, kind: input, shape index: {}]   ;;  %s7087_s2 = inlined_call_operand.vmem [shape: f32[4,3,1], index: 2, kind: input, shape index: {}]   ;;  %s7088_s3 = inlined_call_operand.vmem [shape: f32[1,324], index: 3, kind: input, shape index: {}]   ;;  %s7089_s4 = inlined_call_operand.vmem [shape: f32[2,3,324], index: 4, kind: output, shape index: {}]  }
   0x1 LB: > { %s5124_s16 = sadd.s32 4294967295, %s5579_s15   ;;  %p5128_p0 = scmp.ge.s32.totalorder %s5579_s15, 1  ;;  %s5579_s15 = sphi %s5618_s15, %s14_s15  }
   0x2   : > { %p162_p1 = scmp.lt.s32.totalorder %s5579_s15, 3 }
   0x4   : > { %p163_p2 = pnand %p5128_p0, %p162_p1 }
   0x5   : > { %p188_p3 = scmp.lt.s32.totalorder (!%p163_p2), %s5124_s16, 1  ;;  %s5581_s21 = smov (!%p163_p2), 90  }
   0x6   : > { %166 = sbr.rel (%p163_p2) target bundleno = 2074 (0x81a), region = 36  ;;  %s5582_s22 = smov (!%p163_p2), 108  }
   0x7   : > { %s5583_s23 = smov (!%p163_p2), 92   ;;  %s5584_s24 = smov (!%p163_p2), 126  }
   0x8   : > { %s5585_s25 = smov (!%p163_p2), 110   ;;  %s5586_s26 = smov (!%p163_p2), 91  }
   0x9   : > { %s5587_s27 = smov (!%p163_p2), 109   ;;  %s5589_s28 = smov (!%p163_p2), 127  }
   0xa   : > { %s5592_s9 = smov (!%p163_p2), 19  }
   0xb   : > { %s7147_s16 = smov (!%p188_p3, %s5124_s16), 1  ;;  %vm201_vm0 = vcmask 862208   ;;  %v5588_v23 = vmov 0.0   ;;  %v352_v26 = vld [vmem:[%s7087_s2] sm:$0x7]  ;;  %v5590_v27 = vmov 0  }
   0xc   : > { %s5523_s17 = smul.u32 12, %s7147_s16  ;;  %440 = vmatprep.mubr.f32.mxu0 %v5588_v23  ;;  %556 = vmatprep.mubr.f32.mxu1 %v5588_v23  ;;  %vm320_vm1 = vcmask 736256   ;;  %vm323_vm2 = vcmask 1042432   ;;  %vm293_vm3 = vcmask 752640   ;;  %vm278_vm4 = vcmask 883712  }
   0xd   : > { %5544 = vset.pattern.permute.xlu0 %v5590_v27  ;;  %5545 = vset.pattern.permute.xlu1 %v5590_v27  ;;  %vm7097_vm5 = vcmask 744448   ;;  %vm7095_vm6 = vcmask 1044480   ;;  %v351_v57 = vld [vmem:[%s7086_s1] sm:$0x7]  ;;  %vm7096_vm7 = vcmask 220160   ;;  %vm343_vm8 = vcmask 1041408  }
   0xe   : > { %s192_s20 = scalar_lea.vmem %s7085_s0, %s5523_s17  ;;  %vm249_vm9 = vcmask 900096   ;;  %vm234_vm10 = vcmask 1031168   ;;  %vm7098_vm11 = vcmask 891904   ;;  %vm335_vm12 = vcmask 1043456  }
   0xf   : > { %v199_v0 = vld [vmem:[%s192_s20 + $0x8] sm:$0x7]  ;;  %v198_v1 = vld [vmem:[%s192_s20] sm:$0x77]  ;;  %vm331_vm13 = vcmask 1040384   ;;  %vm7094_vm14 = vcmask 1046528  }
  0x10   : > { %202 = vst.msk [vmem:[#allocation2 + $0x8] sm:$0x7] %vm201_vm0, %v199_v0  ;;  %200 = vst [vmem:[#allocation2] sm:$0x77] %v198_v1  ;;  %v360_v0 = vsel %vm7096_vm7, %v351_v57, 0  ;;  %vm7093_vm15 = vcmask 1039360  }
  0x11   : > { %vm7090_vm0 = vcmask 1045504  }
  0x17   : > { %v5634_v2 = vld [vmem:[#allocation2 + $0x8] sm:$0x7]  ;;  %v5639_v4 = vld [vmem:[#allocation2] sm:$0x77] }
  0x18   : > { %318 = vrot.lane.b32.xlu0 %v5634_v2, %s5581_s21  ;;  %v271_v3 = vrot.slane %v5634_v2, 1  ;;  %v286_v5 = vrot.slane %v5634_v2, 6  ;;  %v5647_v6 = vcombine.high %v5639_v4, %v5639_v4  ;;  %v269_v7 = vrot.slane %v5639_v4, 1 }
  0x19   : > { %v227_v8 = vrot.slane %v5634_v2, 2  ;;  %v242_v10 = vrot.slane %v5634_v2, 7  ;;  %v284_v14 = vrot.slane %v5639_v4, 6  ;;  %v301_v16 = vrot.slane %v5634_v2, 3 }
  0x1a   : > { %276 = vrot.lane.b32.xlu1 %v271_v3, %s5582_s22  ;;  %v270_v9 = vrot.slane %v5647_v6, 1  ;;  %v226_v11 = vrot.slane %v5647_v6, 2  ;;  %v285_v12 = vrot.slane %v5647_v6, 6  ;;  %v241_v13 = vrot.slane %v5647_v6, 7 }
  0x1b   : > { %v300_v15 = vrot.slane %v5647_v6, 3  ;;  %v225_v17 = vrot.slane %v5639_v4, 2  ;;  %v240_v18 = vrot.slane %v5639_v4, 7  ;;  %v256_v19 = vcombine.low %v5634_v2, %v5634_v2 }
  0x1c   : > { %314 = vrot.lane.b32.xlu0 %v5639_v4, %s5581_s21  ;;  %v299_v20 = vrot.slane %v5639_v4, 3  ;;  %v255_v21 = vcombine.low %v5639_v4, %v5639_v4  ;;  %v211_v22 = vrot.slane %v5647_v6, 5  ;;  %v212_v24 = vrot.slane %v5634_v2, 5 }
  0x1d   : > { %v210_v25 = vrot.slane %v5639_v4, 5 }
  0x1e   : > { %291 = vrot.lane.b32.xlu1 %v286_v5, %s5583_s23 }
  0x20   : > { %316 = vrot.lane.b32.xlu0 %v5647_v6, %s5581_s21 }
  0x22   : > { %272 = vrot.lane.b32.xlu1 %v269_v7, %s5582_s22  ;;  %v5752_v7 = vand.u32 4294901760, %v360_v0 }
  0x24   : > { %232 = vrot.lane.b32.xlu0 %v227_v8, %s5584_s24 }
  0x26   : > { %274 = vrot.lane.b32.xlu1 %v270_v9, %s5582_s22 }
  0x28   : > { %247 = vrot.lane.b32.xlu0 %v242_v10, %s5585_s25 }
  0x2a   : > { %230 = vrot.lane.b32.xlu1 %v226_v11, %s5584_s24 }
  0x2c   : > { %289 = vrot.lane.b32.xlu0 %v285_v12, %s5583_s23 }
  0x2e   : > { %245 = vrot.lane.b32.xlu1 %v241_v13, %s5585_s25 }
  0x30   : > { %287 = vrot.lane.b32.xlu0 %v284_v14, %s5583_s23 }
  0x32   : > { %304 = vrot.lane.b32.xlu1 %v300_v15, %s5586_s26 }
  0x34   : > { %306 = vrot.lane.b32.xlu0 %v301_v16, %s5586_s26 }
  0x36   : > { %228 = vrot.lane.b32.xlu1 %v225_v17, %s5584_s24  ;;  %v5769_v17 = vsub.f32 %v360_v0, %v5752_v7 }
  0x38   : > { %243 = vrot.lane.b32.xlu0 %v240_v18, %s5585_s25 }
  0x3a   : > { %259 = vrot.lane.b32.xlu1 %v5639_v4, %s5587_s27 }
  0x3c   : > { %261 = vrot.lane.b32.xlu0 %v256_v19, %s5587_s27 }
  0x3e   : > { %302 = vrot.lane.b32.xlu1 %v299_v20, %s5586_s26 }
  0x40   : > { %257 = vrot.lane.b32.xlu0 %v255_v21, %s5587_s27 }
  0x42   : > { %215 = vrot.lane.b32.xlu1 %v211_v22, %s5589_s28 }
  0x44   : > { %217 = vrot.lane.b32.xlu0 %v212_v24, %s5589_s28 }
  0x46   : > { %213 = vrot.lane.b32.xlu1 %v210_v25, %s5589_s28 }
  0x48   : > { %355 = vperm.xlu0 %5544, %v352_v26  }
  0x8a   : > { %v5697_v28 = vpop.permute.xlu0 %318 }
  0x8c   : > { %v5699_v29 = vpop.permute.xlu1 %276 }
  0x8e   : > { %v315_v30 = vpop.permute.xlu0 %314 }
  0x90   : > { %v5701_v31 = vpop.permute.xlu1 %291 }
  0x92   : > { %v317_v32 = vpop.permute.xlu0 %316 }
  0x93   : > { %v321_v33 = vsel %vm320_vm1, %v315_v30, %v317_v32  ;;  %v322_v34 = vsel %vm320_vm1, %v317_v32, %v5697_v28 }
  0x94   : > { %v362_v35 = vsel %vm323_vm2, %v321_v33, 0  ;;  %v364_v36 = vsel %vm323_vm2, %v322_v34, 0  ;;  %v273_v37 = vpop.permute.xlu1 %272 }
  0x95   : > { %v5708_v38 = vand.u32 4294901760, %v364_v36  ;;  %v5710_v39 = vand.u32 4294901760, %v362_v35 }
  0x96   : > { %v5712_v40 = vpop.permute.xlu0 %232 }
  0x97   : > { %v5715_v41 = vsub.f32 %v362_v35, %v5710_v39  ;;  %393 = vmatprep.subr.mxu0 %v5708_v38  ;;  %v5719_v42 = vsub.f32 %v364_v36, %v5708_v38 }
  0x98   : > { %395 = vmatpush1.msra.mxu0 %v5710_v39  ;;  %v275_v43 = vpop.permute.xlu1 %274 }
  0x99   : > { %v478_v44 = vand.u32 4294901760, %v5719_v42  ;;  %v484_v45 = vand.u32 4294901760, %v5715_v41  ;;  %v280_v58 = vsel %vm278_vm4, %v275_v43, %v5699_v29  ;;  %v279_v18 = vsel %vm278_vm4, %v273_v37, %v275_v43 }
  0x9a   : > { %v5724_v46 = vpop.permute.xlu0 %247  ;;  %v5786_v37 = vand.u32 4294901760, %v5769_v17 }
  0x9b   : > { %v479_v47 = vsub.f32 %v5719_v42, %v478_v44  ;;  %v485_v48 = vsub.f32 %v5715_v41, %v484_v45 }
  0x9c   : > { %v231_v49 = vpop.permute.xlu1 %230 }
  0x9d   : > { %v480_v50 = vand.u32 4294901760, %v479_v47  ;;  %v486_v51 = vand.u32 4294901760, %v485_v48  ;;  %v236_v11 = vsel %vm234_vm10, %v231_v49, %v5712_v40 }
  0x9e   : > { %v290_v52 = vpop.permute.xlu0 %289 }
  0x9f   : > { %481 = vmatprep.subr.mxu1 %v480_v50  ;;  %v295_v55 = vsel %vm293_vm3, %v290_v52, %v5701_v31 }
  0xa0   : > { %487 = vmatpush1.msra.mxu1 %v486_v51  ;;  %v246_v53 = vpop.permute.xlu1 %245  ;;  %v345_v60 = vsel %vm343_vm8, %v280_v58, %v295_v55 }
  0xa1   : > { %v251_v8 = vsel %vm249_vm9, %v246_v53, %v5724_v46 }
  0xa2   : > { %v288_v54 = vpop.permute.xlu0 %287  ;;  %v333_v14 = vsel %vm331_vm13, %v236_v11, %v251_v8 }
  0xa3   : > { %v294_v12 = vsel %vm293_vm3, %v288_v54, %v290_v52 }
  0xa4   : > { %v305_v56 = vpop.permute.xlu1 %304  ;;  %v344_v22 = vsel %vm343_vm8, %v279_v18, %v294_v12 }
  0xa6   : > { %v5739_v59 = vpop.permute.xlu0 %306 }
  0xa7   : > { %v310_v61 = vsel %vm7097_vm5, %v305_v56, %v5739_v59 }
  0xa8   : > { %v349_v62 = vsel %vm7095_vm6, %v345_v60, %v310_v61  ;;  %v229_v63 = vpop.permute.xlu1 %228 }
  0xa9   : > { %v5746_v1 = vand.u32 4294901760, %v349_v62  ;;  %v235_v27 = vsel %vm234_vm10, %v229_v63, %v231_v49 }
  0xaa   : > { %v244_v3 = vpop.permute.xlu0 %243 }
  0xab   : > { %v5749_v5 = vsub.f32 %v349_v62, %v5746_v1  ;;  %397 = vmatprep.subr.mxu0 %v5746_v1  ;;  %v250_v19 = vsel %vm249_vm9, %v244_v3, %v246_v53 }
  0xac   : > { %v260_v9 = vpop.permute.xlu1 %259  ;;  %v332_v34 = vsel %vm331_vm13, %v235_v27, %v250_v19 }
  0xad   : > { %v490_v10 = vand.u32 4294901760, %v5749_v5 }
  0xae   : > { %v5760_v13 = vpop.permute.xlu0 %261 }
  0xaf   : > { %v265_v15 = vsel %vm7098_vm11, %v260_v9, %v5760_v13  ;;  %v491_v16 = vsub.f32 %v5749_v5, %v490_v10 }
  0xb0   : > { %v337_v20 = vsel %vm335_vm12, %v333_v14, %v265_v15  ;;  %v303_v21 = vpop.permute.xlu1 %302 }
  0xb1   : > { %v341_v24 = vsel %vm7094_vm14, %v337_v20, %v280_v58  ;;  %v309_v25 = vsel %vm7097_vm5, %v303_v21, %v305_v56  ;;  %v492_v26 = vand.u32 4294901760, %v491_v16  ;;  %v444_v56 = vsub.f32 %v5769_v17, %v5786_v37 }
  0xb2   : > { %v5778_v30 = vand.u32 4294901760, %v341_v24  ;;  %v348_v32 = vsel %vm7095_vm6, %v344_v22, %v309_v25  ;;  %v258_v33 = vpop.permute.xlu0 %257 }
  0xb3   : > { %v5782_v35 = vand.u32 4294901760, %v348_v32  ;;  %v264_v36 = vsel %vm7098_vm11, %v258_v33, %v260_v9  ;;  %493 = vmatprep.subr.mxu1 %v492_v26  ;;  %v5826_v14 = vand.u32 4294901760, %v444_v56  ;;  %v346_v33 = vsel %vm343_vm8, %v5699_v29, %v5701_v31 }
  0xb4   : > { %v5789_v43 = vsub.f32 %v341_v24, %v5778_v30  ;;  %v336_v47 = vsel %vm335_vm12, %v332_v34, %v264_v36  ;;  %v216_v48 = vpop.permute.xlu1 %215 }
  0xb5   : > { %v5793_v49 = vsub.f32 %v348_v32, %v5782_v35  ;;  %v340_v50 = vsel %vm7094_vm14, %v336_v47, %v279_v18  ;;  %399 = vmatpush1.msra.mxu0 %v5782_v35  ;;  %v334_v32 = vsel %vm331_vm13, %v5712_v40, %v5724_v46 }
  0xb6   : > { %v5797_v51 = vand.u32 4294901760, %v340_v50  ;;  %v5799_v52 = vpop.permute.xlu0 %217  ;;  %401 = vmatprep.subr.mxu0 %v5778_v30  ;;  %v502_v53 = vand.u32 4294901760, %v5789_v43  ;;  %v338_v34 = vsel %vm335_vm12, %v334_v32, %v5760_v13 }
  0xb7   : > { %v221_v54 = vsel %vm7093_vm15, %v216_v48, %v5799_v52  ;;  %v496_v55 = vand.u32 4294901760, %v5793_v49  ;;  %v326_v31 = vsel %vm323_vm2, %v5634_v2, %v5799_v52 }
  0xb8   : > { %v5809_v57 = vsub.f32 %v340_v50, %v5797_v51  ;;  %v325_v58 = vsel %vm323_vm2, %v5647_v6, %v221_v54  ;;  %403 = vmatpush1.msra.mxu0 %v5797_v51  ;;  %v214_v60 = vpop.permute.xlu1 %213  ;;  %v503_v61 = vsub.f32 %v5789_v43, %v502_v53 }
  0xb9   : > { %v329_v62 = vsel %vm7090_vm0, %v325_v58, %v236_v11  ;;  %v220_v63 = vsel %vm7093_vm15, %v214_v60, %v216_v48  ;;  %v497_v0 = vsub.f32 %v5793_v49, %v496_v55  ;;  %vm1448_vm15 = vcmask 1046532  }
  0xba   : > { %v5820_v3 = vand.u32 4294901760, %v329_v62  ;;  %v324_v8 = vsel %vm323_vm2, %v5639_v4, %v220_v63  ;;  %v508_v6 = vand.u32 4294901760, %v5809_v57  ;;  %v504_v11 = vand.u32 4294901760, %v503_v61 }
  0xbb   : > { %v328_v9 = vsel %vm7090_vm0, %v324_v8, %v235_v27  ;;  %v498_v12 = vand.u32 4294901760, %v497_v0  ;;  %v366_v27 = vsel %vm323_vm2, %v5697_v28, 0  ;;  %v350_v28 = vsel %vm7095_vm6, %v346_v33, %v5739_v59 }
  0xbc   : > { %v513_v15 = vsub.f32 %v329_v62, %v5820_v3  ;;  %v5829_v16 = vand.u32 4294901760, %v328_v9  ;;  %405 = vmatprep.subr.mxu0 %v5820_v3  ;;  %v509_v18 = vsub.f32 %v5809_v57, %v508_v6 }
  0xbd   : > { %499 = vmatpush1.msra.mxu1 %v498_v12 }
  0xbe   : > { %v519_v19 = vsub.f32 %v328_v9, %v5829_v16  ;;  %407 = vmatpush1.msra.mxu0 %v5829_v16  ;;  %505 = vmatprep.subr.mxu1 %v504_v11  ;;  %v510_v4 = vand.u32 4294901760, %v509_v18  ;;  %v514_v20 = vand.u32 4294901760, %v513_v15 }
  0xbf   : > { %590 = vmatprep.subr.mxu0 %v5719_v42  ;;  %446 = vmatmul.mubr.f32.vlgmr.msra.gmra.mxu0 %v5826_v14  ;;  %v5866_v42 = vand.u32 4294901760, %v366_v27 }
  0xc0   : > { %511 = vmatpush1.msra.mxu1 %v510_v4  ;;  %593 = vmatpush1.msra.mxu0 %v5715_v41  ;;  %v515_v21 = vsub.f32 %v513_v15, %v514_v20  ;;  %v520_v22 = vand.u32 4294901760, %v519_v19  ;;  %v342_v41 = vsel %vm7094_vm14, %v338_v34, %v5699_v29  ;;  %vm1442_vm14 = vcmask 154624  }
  0xc1   : > { %596 = vmatprep.subr.mxu0 %v5749_v5  ;;  %644 = vmatprep.mubr.f32.mxu0 %v5588_v23  ;;  %v5884_v2 = vsub.f32 %v366_v27, %v5866_v42  ;;  %v5886_v29 = vand.u32 4294901760, %v342_v41 }
  0xc2   : > { %599 = vmatpush1.msra.mxu0 %v5793_v49  ;;  %v516_v24 = vand.u32 4294901760, %v515_v21  ;;  %v521_v25 = vsub.f32 %v519_v19, %v520_v22 }
  0xc3   : > { %602 = vmatprep.subr.mxu0 %v5789_v43  ;;  %v5902_v5 = vsub.f32 %v342_v41, %v5886_v29  ;;  %v203_v41 = vld [vmem:[%s7088_s3] sm:$0x7] }
  0xc4   : > { %517 = vmatprep.subr.mxu1 %v516_v24  ;;  %605 = vmatpush1.msra.mxu0 %v5809_v57  ;;  %v522_v26 = vand.u32 4294901760, %v521_v25  ;;  %v1415_v24 = vlaneseq }
  0xc5   : > { %608 = vmatprep.subr.mxu0 %v513_v15 }
  0xc6   : > { %523 = vmatpush1.msra.mxu1 %v522_v26  ;;  %611 = vmatpush1.msra.mxu0 %v519_v19  ;;  %v1416_v32 = vshrl.u32 %v1415_v24, 7 }
  0xc7   : > { %558 = vmatmul.mubr.f32.vlgmr.msra.gmra.mxu1 %v5752_v7  ;;  %678 = vmatprep.subr.mxu1 %v5708_v38 }
  0xc8   : > { %762 = vmatprep.subr.mxu0 %v478_v44  ;;  %647 = vmatmul.mubr.f32.vlgmr.msra.gmra.mxu0 %v5769_v17  ;;  %v5877_v44 = vand.u32 4294901760, %v350_v28 }
  0xc9   : > { %680 = vmatpush1.msra.mxu1 %v5710_v39  ;;  %766 = vmatpush1.msra.mxu0 %v484_v45  ;;  %v330_v45 = vsel %vm7090_vm0, %v326_v31, %v5712_v40  ;;  %v1017_v40 = vand.u32 4294901760, %v5884_v2  ;;  %vm7091_vm0 = vmmov 0  }
  0xca   : > { %682 = vmatprep.subr.mxu1 %v5746_v1  ;;  %770 = vmatprep.subr.mxu0 %v490_v10  ;;  %v5892_v46 = vsub.f32 %v350_v28, %v5877_v44  ;;  %v5894_v59 = vand.u32 4294901760, %v330_v45  ;;  %v1417_v28 = vsub.s32 0, %v1416_v32 }
  0xcb   : > { %684 = vmatpush1.msra.mxu1 %v5782_v35  ;;  %774 = vmatpush1.msra.mxu0 %v496_v55 }
  0xcc   : > { %686 = vmatprep.subr.mxu1 %v5778_v30  ;;  %778 = vmatprep.subr.mxu0 %v502_v53  ;;  %v1024_v10 = vand.u32 4294901760, %v5892_v46 }
  0xcd   : > { %688 = vmatpush1.msra.mxu1 %v5797_v51  ;;  %782 = vmatpush1.msra.mxu0 %v508_v6 }
  0xce   : > { %690 = vmatprep.subr.mxu1 %v5820_v3  ;;  %786 = vmatprep.subr.mxu0 %v514_v20  ;;  %v1025_v13 = vsub.f32 %v5892_v46, %v1024_v10 }
  0xcf   : > { %692 = vmatpush1.msra.mxu1 %v5829_v16  ;;  %725 = vmatprep.mubr.f32.mxu1 %v5588_v23 }
  0xd0   : > { %790 = vmatpush1.msra.mxu0 %v520_v22  ;;  %729 = vmatmul.mubr.f32.vlgmr.msra.gmra.mxu1 %v5786_v37  ;;  %v1026_v43 = vand.u32 4294901760, %v1025_v13 }
  0xd1   : > { %823 = vmatprep.mubr.f32.mxu0 %v5588_v23  ;;  %856 = vmatprep.subr.mxu1 %v5708_v38  ;;  %v1037_v38 = vsub.f32 %v330_v45, %v5894_v59 }
  0xd2   : > { %5259 = vmatprep.subr.mxu0 %v5588_v23  ;;  %825 = vmatmul.mubr.f32.vlgmr.msra.gmra.mxu0 %v5752_v7 }
  0xd3   : > { %858 = vmatpush1.msra.mxu1 %v5710_v39  ;;  %5260 = vmatpush3.msra.mxu0 %v5866_v42  ;;  %v1031_v39 = vand.u32 4294901760, %v5902_v5 }
  0xd4   : > { %860 = vmatprep.subr.mxu1 %v5746_v1  ;;  %5261 = vmatprep.subr.mxu0 %v5588_v23  ;;  %v1018_v1 = vsub.f32 %v5884_v2, %v1017_v40 }
  0xd5   : > { %862 = vmatpush1.msra.mxu1 %v5782_v35  ;;  %5262 = vmatpush3.msra.mxu0 %v5877_v44  ;;  %v1038_v35 = vand.u32 4294901760, %v1037_v38  ;;  %v1032_v36 = vsub.f32 %v5902_v5, %v1031_v39 }
  0xd6   : > { %864 = vmatprep.subr.mxu1 %v5778_v30  ;;  %5263 = vmatprep.subr.mxu0 %v5588_v23  ;;  %v1019_v30 = vand.u32 4294901760, %v1018_v1 }
  0xd7   : > { %866 = vmatpush1.msra.mxu1 %v5797_v51  ;;  %5264 = vmatpush3.msra.mxu0 %v5886_v29  ;;  %v1039_v47 = vsub.f32 %v1037_v38, %v1038_v35  ;;  %v1033_v48 = vand.u32 4294901760, %v1032_v36 }
  0xd8   : > { %868 = vmatprep.subr.mxu1 %v5820_v3  ;;  %5265 = vmatprep.subr.mxu0 %v5588_v23 }
  0xd9   : > { %870 = vmatpush1.msra.mxu1 %v5829_v16  ;;  %903 = vmatprep.mubr.f32.mxu1 %v5588_v23  ;;  %v1040_v49 = vand.u32 4294901760, %v1039_v47 }
  0xda   : > { %5266 = vmatpush3.msra.mxu0 %v5894_v59  ;;  %5267 = vmatprep.mubr.msk.f32.mxu0 %vm7091_vm0, %v5588_v23 }
  0xdb   : > { %905 = vmatmul.mubr.f32.vlgmr.msra.gmra.mxu1 %v5752_v7  ;;  %5268 = vmatmul.mubr.f32.vlgmr.msra.gmra.mxu0 %v5826_v14 }
  0xdc   : > { %5270 = vmatprep.subr.mxu1 %v5588_v23  ;;  %5281 = vmatprep.subr.mxu0 %v5588_v23 }
  0xdd   : > { %5271 = vmatpush3.msra.mxu1 %v1019_v30  ;;  %5282 = vmatpush3.msra.mxu0 %v5884_v2 }
  0xde   : > { %5272 = vmatprep.subr.mxu1 %v5588_v23  ;;  %5283 = vmatprep.subr.mxu0 %v5588_v23 }
  0xdf   : > { %5273 = vmatpush3.msra.mxu1 %v1026_v43  ;;  %5284 = vmatpush3.msra.mxu0 %v5892_v46 }
  0xe0   : > { %5274 = vmatprep.subr.mxu1 %v5588_v23  ;;  %5285 = vmatprep.subr.mxu0 %v5588_v23 }
  0xe1   : > { %5275 = vmatpush3.msra.mxu1 %v1033_v48  ;;  %5286 = vmatpush3.msra.mxu0 %v5902_v5  ;;  %v5980_v5 = vrot.slane %v203_v41, %v1417_v28 }
  0xe2   : > { %5276 = vmatprep.subr.mxu1 %v5588_v23  ;;  %5287 = vmatprep.subr.mxu0 %v5588_v23 }
  0xe3   : > { %5277 = vmatpush3.msra.mxu1 %v1040_v49  ;;  %5278 = vmatprep.mubr.msk.f32.mxu1 %vm7091_vm0, %v5588_v23 }
  0xe4   : > { %5288 = vmatpush3.msra.mxu0 %v1037_v38  ;;  %5279 = vmatmul.mubr.f32.vlgmr.msra.gmra.mxu1 %v5752_v7 }
  0xe5   : > { %5289 = vmatprep.mubr.msk.f32.mxu0 %vm7091_vm0, %v5588_v23  ;;  %5292 = vmatprep.subr.mxu1 %v5588_v23 }
  0xe6   : > { %5303 = vmatprep.subr.mxu0 %v5588_v23  ;;  %5290 = vmatmul.mubr.f32.vlgmr.msra.gmra.mxu0 %v5769_v17 }
  0xe7   : > { %5293 = vmatpush3.msra.mxu1 %v5866_v42  ;;  %5304 = vmatpush3.msra.mxu0 %v1017_v40 }
  0xe8   : > { %5294 = vmatprep.subr.mxu1 %v5588_v23  ;;  %5305 = vmatprep.subr.mxu0 %v5588_v23 }
  0xe9   : > { %5295 = vmatpush3.msra.mxu1 %v5877_v44  ;;  %5306 = vmatpush3.msra.mxu0 %v1024_v10 }
  0xea   : > { %5296 = vmatprep.subr.mxu1 %v5588_v23  ;;  %5307 = vmatprep.subr.mxu0 %v5588_v23 }
  0xeb   : > { %5297 = vmatpush3.msra.mxu1 %v5886_v29  ;;  %5308 = vmatpush3.msra.mxu0 %v1031_v39 }
  0xec   : > { %5298 = vmatprep.subr.mxu1 %v5588_v23  ;;  %5309 = vmatprep.subr.mxu0 %v5588_v23 }
  0xed   : > { %5299 = vmatpush3.msra.mxu1 %v5894_v59  ;;  %5300 = vmatprep.mubr.msk.f32.mxu1 %vm7091_vm0, %v5588_v23 }
  0xee   : > { %5310 = vmatpush3.msra.mxu0 %v1038_v35  ;;  %5301 = vmatmul.mubr.f32.vlgmr.msra.gmra.mxu1 %v5786_v37  ;;  %v356_v37 = vpop.permute.xlu0 %355 }
  0xef   : > { %5314 = vmatprep.subr.mxu1 %v5588_v23  ;;  %5311 = vmatprep.mubr.msk.f32.mxu0 %vm7091_vm0, %v5588_v23 }
  0xf0   : > { %5315 = vmatpush3.msra.mxu1 %v5866_v42  ;;  %5312 = vmatmul.mubr.f32.vlgmr.msra.gmra.mxu0 %v5752_v7  ;;  %v1421_v42 = vsub.s32 1, %v1416_v32 }
  0xf1   : > { %5316 = vmatprep.subr.mxu1 %v5588_v23  ;;  %5322 = vmatprep.mubr.msk.f32.mxu1 %vm7091_vm0, %v5588_v23  ;;  %vm1447_vm0 = vcmask 1042584  }
  0xf2   : > { %5317 = vmatpush3.msra.mxu1 %v5877_v44  ;;  %1675 = vmatprep.mubr.f32.mxu0 %v5588_v23  ;;  %v5982_v10 = vrot.slane %v203_v41, %v1421_v42  ;;  %vm5991_vm6 = vmor %vm1448_vm15, %vm1447_vm0  ;;  %vm7099_vm15 = vcmask 706560   ;;  %v5132_v42 = vld [vmem:[%s7087_s2 + $0x4] sm:$0x7]  ;;  %vm7102_vm0 = vcmask 1044480  }
  0xf3   : > { %5318 = vmatprep.subr.mxu1 %v5588_v23 }
  0xf4   : > { %5319 = vmatpush3.msra.mxu1 %v5886_v29 }
  0xf5   : > { %5320 = vmatprep.subr.mxu1 %v5588_v23 }
  0xf6   : > { %5321 = vmatpush3.msra.mxu1 %v5894_v59 }
  0xf7   : > { %5323 = vmatmul.mubr.f32.vlgmr.msra.gmra.mxu1 %v5752_v7 }
  0xf8   : > { %1791 = vmatprep.mubr.f32.mxu1 %v5588_v23 }
 0x17f   : > { %v447_v17 = vpop.f32.mrf.mxu0 }
 0x180   : > { %v448_v52 = vadd.f32 %v447_v17, %v356_v37 }
 0x181   : > { %v449_v50 = vpop.f32.mrf.mxu0 }
 0x182   : > { %v450_v53 = vadd.f32 %v449_v50, %v356_v37 }
 0x187   : > { %v559_v51 = vpop.f32.mrf.mxu1 }
 0x188   : > { %v648_v55 = vpop.f32.mrf.mxu0  ;;  %v560_v56 = vadd.f32 %v559_v51, %v448_v52  ;;  %v1425_v52 = vsub.s32 2, %v1416_v32 }
 0x189   : > { %v561_v54 = vpop.f32.mrf.mxu1 }
 0x18a   : > { %v562_v58 = vadd.f32 %v561_v54, %v450_v53  ;;  %v650_v60 = vpop.f32.mrf.mxu0  ;;  %v649_v61 = vadd.f32 %v648_v55, %v560_v56  ;;  %v5987_v56 = vrot.slane %v203_v41, %v1425_v52 }
 0x18c   : > { %v651_v0 = vadd.f32 %v650_v60, %v562_v58 }
 0x190   : > { %v730_v57 = vpop.f32.mrf.mxu1 }
 0x191   : > { %v731_v3 = vadd.f32 %v730_v57, %v649_v61 }
 0x192   : > { %v732_v62 = vpop.f32.mrf.mxu1  ;;  %v826_v63 = vpop.f32.mrf.mxu0 }
 0x193   : > { %v733_v7 = vadd.f32 %v732_v62, %v651_v0  ;;  %v827_v6 = vadd.f32 %v826_v63, %v731_v3 }
 0x194   : > { %v828_v8 = vpop.f32.mrf.mxu0 }
 0x195   : > { %v829_v14 = vadd.f32 %v828_v8, %v733_v7 }
 0x19b   : > { %v906_v9 = vpop.f32.mrf.mxu1  ;;  %v986_v12 = vpop.f32.mrf.mxu0 }
 0x19c   : > { %v907_v15 = vadd.f32 %v906_v9, %v827_v6  ;;  %v987_v33 = vadd.f32 %v986_v12, %v356_v37 }
 0x19d   : > { %v908_v16 = vpop.f32.mrf.mxu1  ;;  %v5269_v11 = vpop.f32.mrf.mxu0 }
 0x19e   : > { %v1396_v18 = vmax.f32 %v907_v15, 0.0  ;;  %v909_v19 = vadd.f32 %v908_v16, %v829_v14 }
 0x1a0   : > { %v1402_v4 = vmul.f32 0.70710677, %v1396_v18  ;;  %v1397_v20 = vmax.f32 %v909_v19, 0.0  ;;  %v1399_v45 = vmul.f32 0.5, %v1396_v18 }
 0x1a2   : > { %5555 = verf.f32 %v1402_v4  ;;  %v1403_v21 = vmul.f32 0.70710677, %v1397_v20  ;;  %v1400_v39 = vmul.f32 0.5, %v1397_v20 }
 0x1a4   : > { %5557 = verf.f32 %v1403_v21  ;;  %v1077_v22 = vpop.f32.mrf.mxu1 }
 0x1a5   : > { %v1078_v34 = vadd.f32 %v1077_v22, %v987_v33 }
 0x1a6   : > { %v1157_v25 = vpop.f32.mrf.mxu0  ;;  %v5280_v26 = vpop.f32.mrf.mxu1 }
 0x1a7   : > { %v1158_v29 = vadd.f32 %v1157_v25, %v1078_v34 }
 0x1a8   : > { %v5291_v27 = vpop.f32.mrf.mxu0 }
 0x1ae   : > { %v1234_v31 = vpop.f32.mrf.mxu1 }
 0x1af   : > { %v5556_v44 = vpop.eup %5555  ;;  %v1235_v13 = vadd.f32 %v1234_v31, %v1158_v29 }
 0x1b0   : > { %v1408_v2 = vadd.f32 1.0, %v5556_v44  ;;  %v1317_v46 = vpop.f32.mrf.mxu0  ;;  %v5302_v59 = vpop.f32.mrf.mxu1 }
 0x1b1   : > { %v5558_v40 = vpop.eup %5557  ;;  %v1318_v36 = vadd.f32 %v1317_v46, %v1235_v13 }
 0x1b2   : > { %v1411_v38 = vmul.f32 %v1408_v2, %v1399_v45  ;;  %v1409_v1 = vadd.f32 1.0, %v5558_v40  ;;  %v5313_v35 = vpop.f32.mrf.mxu0 }
 0x1b4   : > { %v1412_v30 = vmul.f32 %v1409_v1, %v1400_v39  ;;  %v1430_v43 = vmul.f32 %v5980_v5, %v1411_v38 }
 0x1b6   : > { %v1431_v47 = vmul.f32 %v5982_v10, %v1412_v30 }
 0x1b7   : > { %v1392_v48 = vpop.f32.mrf.mxu1 }
 0x1b8   : > { %v1393_v49 = vadd.f32 %v1392_v48, %v1318_v36  ;;  %v1436_v17 = vcombine.low %v1430_v43, %v1431_v47  ;;  %v5131_v48 = vld [vmem:[%s7086_s1 + $0x4] sm:$0x7] }
 0x1b9   : > { %v5324_v37 = vpop.f32.mrf.mxu1 }
 0x1ba   : > { %v1398_v50 = vmax.f32 %v1393_v49, 0.0  ;;  %1437 = vrot.lane.b32.xlu1 %v1436_v17, %s5592_s9 }
 0x1bc   : > { %v1404_v51 = vmul.f32 0.70710677, %v1398_v50  ;;  %v1401_v54 = vmul.f32 0.5, %v1398_v50 }
 0x1be   : > { %5559 = verf.f32 %v1404_v51 }
 0x1cb   : > { %v5560_v53 = vpop.eup %5559 }
 0x1cc   : > { %v1410_v55 = vadd.f32 1.0, %v5560_v53 }
 0x1ce   : > { %v1413_v57 = vmul.f32 %v1410_v55, %v1401_v54  ;;  %v1595_v54 = vsel %vm7096_vm7, %v5131_v48, 0  ;;  %vm7103_vm7 = vcmask 1046528  }
 0x1d0   : > { %v1432_v58 = vmul.f32 %v5987_v56, %v1413_v57 }
 0x1d2   : > { %1439 = vrot.lane.b32.xlu1 %v1432_v58, %s5592_s9 }
 0x22c   : > { %v1438_v60 = vpop.permute.xlu1 %1437 }
 0x22d   : > { %v1441_v62 = vrot.slane %v1438_v60, 4 }
 0x22f   : > { %v1443_v63 = vsel %vm1442_vm14, %v1441_v62, %v1438_v60 }
 0x230   : > { %1450 = vst.msk [vmem:[#allocation2] sm:$0x77] %vm5991_vm6, %v1443_v63 }
 0x237   : > { %v5998_v0 = vld [vmem:[#allocation2] sm:$0x77] }
 0x238   : > { %1505 = vrot.lane.b32.xlu1 %v5998_v0, %s5587_s27  ;;  %1556 = vrot.lane.b32.xlu0 %v5998_v0, %s5581_s21  ;;  %v1514_v3 = vrot.slane %v5998_v0, 1  ;;  %v6007_v7 = vcombine.high %v5998_v0, %v5998_v0  ;;  %v1473_v8 = vrot.slane %v5998_v0, 2  ;;  %v1528_v6 = vrot.slane %v5998_v0, 6 }
 0x239   : > { %v1542_v9 = vrot.slane %v5998_v0, 3  ;;  %v1487_v12 = vrot.slane %v5998_v0, 7  ;;  %v1501_v16 = vcombine.low %v5998_v0, %v5998_v0  ;;  %v1459_v34 = vrot.slane %v5998_v0, 5 }
 0x23a   : > { %v1474_v11 = vrot.slane %v6007_v7, 2  ;;  %v1515_v18 = vrot.slane %v6007_v7, 1  ;;  %v1488_v19 = vrot.slane %v6007_v7, 7  ;;  %v1529_v4 = vrot.slane %v6007_v7, 6 }
 0x23b   : > { %v1543_v20 = vrot.slane %v6007_v7, 3  ;;  %v1460_v32 = vrot.slane %v6007_v7, 5 }
 0x23c   : > { %1517 = vrot.lane.b32.xlu1 %v1514_v3, %s5582_s22  ;;  %1558 = vrot.lane.b32.xlu0 %v6007_v7, %s5581_s21 }
 0x240   : > { %1476 = vrot.lane.b32.xlu1 %v1473_v8, %s5584_s24  ;;  %1531 = vrot.lane.b32.xlu0 %v1528_v6, %s5583_s23  ;;  %v6096_v8 = vand.u32 4294901760, %v1595_v54 }
 0x244   : > { %v1440_v14 = vpop.permute.xlu1 %1439  ;;  %1545 = vrot.lane.b32.xlu1 %v1542_v9, %s5586_s26  ;;  %1490 = vrot.lane.b32.xlu0 %v1487_v12, %s5585_s25 }
 0x245   : > { %v1444_v15 = vsel %vm1442_vm14, %v1441_v62, %v1440_v14 }
 0x246   : > { %1452 = vst.msk [vmem:[#allocation2 + $0x8] sm:$0x7] %vm7099_vm15, %v1444_v15 }
 0x248   : > { %1503 = vrot.lane.b32.xlu0 %v1501_v16, %s5587_s27  ;;  %1478 = vrot.lane.b32.xlu1 %v1474_v11, %s5584_s24 }
 0x24c   : > { %1519 = vrot.lane.b32.xlu0 %v1515_v18, %s5582_s22  ;;  %1492 = vrot.lane.b32.xlu1 %v1488_v19, %s5585_s25  ;;  %v6114_v19 = vsub.f32 %v1595_v54, %v6096_v8 }
 0x24d   : > { %v6033_v21 = vld [vmem:[#allocation2 + $0x8] sm:$0x7] }
 0x24e   : > { %v1475_v22 = vrot.slane %v6033_v21, 2  ;;  %v1516_v24 = vrot.slane %v6033_v21, 1  ;;  %v1489_v25 = vrot.slane %v6033_v21, 7  ;;  %v1530_v26 = vrot.slane %v6033_v21, 6 }
 0x24f   : > { %v1544_v27 = vrot.slane %v6033_v21, 3  ;;  %v1502_v33 = vcombine.low %v6033_v21, %v6033_v21  ;;  %v1461_v28 = vrot.slane %v6033_v21, 5 }
 0x250   : > { %1533 = vrot.lane.b32.xlu0 %v1529_v4, %s5583_s23  ;;  %1547 = vrot.lane.b32.xlu1 %v1543_v20, %s5586_s26 }
 0x254   : > { %1560 = vrot.lane.b32.xlu1 %v6033_v21, %s5581_s21  ;;  %1480 = vrot.lane.b32.xlu0 %v1475_v22, %s5584_s24 }
 0x258   : > { %1521 = vrot.lane.b32.xlu1 %v1516_v24, %s5582_s22  ;;  %1494 = vrot.lane.b32.xlu0 %v1489_v25, %s5585_s25 }
 0x25c   : > { %1535 = vrot.lane.b32.xlu1 %v1530_v26, %s5583_s23  ;;  %1549 = vrot.lane.b32.xlu0 %v1544_v27, %s5586_s26 }
 0x260   : > { %1464 = vrot.lane.b32.xlu1 %v1460_v32, %s5589_s28  ;;  %1507 = vrot.lane.b32.xlu0 %v1502_v33, %s5587_s27 }
 0x264   : > { %1462 = vrot.lane.b32.xlu1 %v1459_v34, %s5589_s28  ;;  %1466 = vrot.lane.b32.xlu0 %v1461_v28, %s5589_s28 }
 0x268   : > { %1591 = vperm.xlu0 %5544, %v5132_v42  }
 0x2aa   : > { %v1557_v31 = vpop.permute.xlu0 %1556  ;;  %v6061_v41 = vpop.permute.xlu1 %1505 }
 0x2ae   : > { %v1559_v44 = vpop.permute.xlu0 %1558  ;;  %v1518_v45 = vpop.permute.xlu1 %1517 }
 0x2af   : > { %v1562_v39 = vsel %vm320_vm1, %v1557_v31, %v1559_v44 }
 0x2b0   : > { %v1597_v35 = vsel %vm323_vm2, %v1562_v39, 0 }
 0x2b1   : > { %v6065_v30 = vand.u32 4294901760, %v1597_v35 }
 0x2b2   : > { %v1532_v2 = vpop.permute.xlu0 %1531  ;;  %v1477_v29 = vpop.permute.xlu1 %1476 }
 0x2b3   : > { %v6078_v50 = vsub.f32 %v1597_v35, %v6065_v30 }
 0x2b5   : > { %v1719_v6 = vand.u32 4294901760, %v6078_v50 }
 0x2b6   : > { %v1491_v46 = vpop.permute.xlu0 %1490  ;;  %v1546_v59 = vpop.permute.xlu1 %1545 }
 0x2b7   : > { %v1720_v22 = vsub.f32 %v6078_v50, %v1719_v6 }
 0x2ba   : > { %v1504_v40 = vpop.permute.xlu0 %1503  ;;  %v1479_v38 = vpop.permute.xlu1 %1478 }
 0x2bb   : > { %v6072_v49 = vsel %vm234_vm10, %v1477_v29, %v1479_v38  ;;  %v1509_v55 = vsel %vm7098_vm11, %v1504_v40, %v6061_v41 }
 0x2be   : > { %v1520_v1 = vpop.permute.xlu0 %1519  ;;  %v1493_v13 = vpop.permute.xlu1 %1492 }
 0x2bf   : > { %v1496_v36 = vsel %vm249_vm9, %v1491_v46, %v1493_v13  ;;  %v1523_v51 = vsel %vm278_vm4, %v1518_v45, %v1520_v1 }
 0x2c0   : > { %v1570_v37 = vsel %vm331_vm13, %v6072_v49, %v1496_v36 }
 0x2c1   : > { %v1573_v62 = vsel %vm335_vm12, %v1570_v37, %v1509_v55 }
 0x2c2   : > { %v1534_v43 = vpop.permute.xlu0 %1533  ;;  %v1548_v47 = vpop.permute.xlu1 %1547  ;;  %v1576_v16 = vsel %vm7103_vm7, %v1573_v62, %v1523_v51  ;;  %vm7104_vm7 = vmmov %vm7102_vm0 }
 0x2c3   : > { %v1537_v17 = vsel %vm293_vm3, %v1532_v2, %v1534_v43  ;;  %v1551_v58 = vsel %vm7097_vm5, %v1546_v59, %v1548_v47  ;;  %v6123_v24 = vand.u32 4294901760, %v1576_v16  ;;  %v1721_v59 = vand.u32 4294901760, %v1720_v22 }
 0x2c4   : > { %v1579_v57 = vsel %vm343_vm8, %v1523_v51, %v1537_v17 }
 0x2c5   : > { %v1582_v9 = vsel %vm7102_vm0, %v1579_v57, %v1551_v58  ;;  %vm7105_vm0 = vcmask 1046528  }
 0x2c6   : > { %v6081_v52 = vpop.permute.xlu0 %1480  ;;  %v6083_v53 = vpop.permute.xlu1 %1560  ;;  %v6110_v11 = vand.u32 4294901760, %v1582_v9 }
 0x2c7   : > { %v1563_v60 = vsel %vm320_vm1, %v1559_v44, %v6083_v53  ;;  %v6142_v44 = vand.u32 4294901760, %v6114_v19  ;;  %v1483_v45 = vsel %vm234_vm10, %v1479_v38, %v6081_v52 }
 0x2c8   : > { %v1599_v63 = vsel %vm323_vm2, %v1563_v60, 0  ;;  %v6138_v28 = vsub.f32 %v1582_v9, %v6110_v11 }
 0x2c9   : > { %v6094_v3 = vand.u32 4294901760, %v1599_v63 }
 0x2ca   : > { %v6100_v12 = vpop.permute.xlu0 %1494  ;;  %v6102_v14 = vpop.permute.xlu1 %1521  ;;  %v1731_v35 = vand.u32 4294901760, %v6138_v28 }
 0x2cb   : > { %v6105_v15 = vsub.f32 %v1599_v63, %v6094_v3  ;;  %1628 = vmatprep.subr.mxu0 %v6094_v3  ;;  %v1524_v25 = vsel %vm278_vm4, %v1520_v1, %v6102_v14  ;;  %v1497_v33 = vsel %vm249_vm9, %v1493_v13, %v6100_v12  ;;  %v6155_v1 = vsub.f32 %v1576_v16, %v6123_v24 }
 0x2cc   : > { %1630 = vmatpush1.msra.mxu0 %v6065_v30  ;;  %v1571_v40 = vsel %vm331_vm13, %v1483_v45, %v1497_v33  ;;  %v1732_v63 = vsub.f32 %v6138_v28, %v1731_v35 }
 0x2cd   : > { %v1713_v18 = vand.u32 4294901760, %v6105_v15  ;;  %v1743_v54 = vand.u32 4294901760, %v6155_v1 }
 0x2ce   : > { %v6116_v4 = vpop.permute.xlu0 %1549  ;;  %v6118_v20 = vpop.permute.xlu1 %1535  ;;  %v1733_v33 = vand.u32 4294901760, %v1732_v63 }
 0x2cf   : > { %v1552_v26 = vsel %vm7097_vm5, %v1548_v47, %v6116_v4  ;;  %v1538_v27 = vsel %vm293_vm3, %v1534_v43, %v6118_v20  ;;  %v1714_v32 = vsub.f32 %v6105_v15, %v1713_v18 }
 0x2d0   : > { %v1580_v34 = vsel %vm343_vm8, %v1524_v25, %v1538_v27 }
 0x2d1   : > { %v1583_v42 = vsel %vm7104_vm7, %v1580_v34, %v1552_v26  ;;  %v1715_v31 = vand.u32 4294901760, %v1714_v32  ;;  %vm7106_vm7 = vcmask 1039360  }
 0x2d2   : > { %v6146_v2 = vand.u32 4294901760, %v1583_v42  ;;  %v6148_v29 = vpop.permute.xlu0 %1507  ;;  %v1465_v46 = vpop.permute.xlu1 %1464  ;;  %vm7107_vm5 = vmmov %vm7106_vm7 }
 0x2d3   : > { %v1510_v39 = vsel %vm7098_vm11, %v6061_v41, %v6148_v29  ;;  %1716 = vmatprep.subr.mxu1 %v1715_v31  ;;  %v1679_v41 = vsub.f32 %v6114_v19, %v6142_v44 }
 0x2d4   : > { %v6158_v13 = vsub.f32 %v1583_v42, %v6146_v2  ;;  %v1574_v38 = vsel %vm335_vm12, %v1571_v40, %v1510_v39  ;;  %1632 = vmatprep.subr.mxu0 %v6146_v2  ;;  %1722 = vmatpush1.msra.mxu1 %v1721_v59 }
 0x2d5   : > { %v1577_v36 = vsel %vm7105_vm0, %v1574_v38, %v1524_v25  ;;  %1634 = vmatpush1.msra.mxu0 %v6110_v11  ;;  %vm7108_vm0 = vcmask 1045504   ;;  %v6191_v9 = vand.u32 4294901760, %v1679_v41  ;;  %v1581_v38 = vsel %vm343_vm8, %v6102_v14, %v6118_v20 }
 0x2d6   : > { %v6167_v43 = vand.u32 4294901760, %v1577_v36  ;;  %v6169_v47 = vpop.permute.xlu0 %1466  ;;  %v1463_v48 = vpop.permute.xlu1 %1462  ;;  %v1725_v17 = vand.u32 4294901760, %v6158_v13  ;;  %vm7109_vm11 = vmmov %vm7108_vm0  ;;  %v1572_v41 = vsel %vm331_vm13, %v6081_v52, %v6100_v12 }
 0x2d7   : > { %v1469_v37 = vsel %vm7106_vm7, %v1465_v46, %v6169_v47  ;;  %v1468_v51 = vsel %vm7107_vm5, %v1463_v48, %v1465_v46  ;;  %v1575_v48 = vsel %vm335_vm12, %v1572_v41, %v6148_v29  ;;  %vm7110_vm5 = vcmask 1044480   ;;  %vm7112_vm7 = vmmov %vm7108_vm0 }
 0x2d8   : > { %v6177_v55 = vsub.f32 %v1577_v36, %v6167_v43  ;;  %v1565_v57 = vsel %vm323_vm2, %v6007_v7, %v1469_v37  ;;  %v1564_v58 = vsel %vm323_vm2, %v5998_v0, %v1468_v51  ;;  %1636 = vmatprep.subr.mxu0 %v6167_v43  ;;  %v1726_v0 = vsub.f32 %v6158_v13, %v1725_v17 }
 0x2d9   : > { %v1568_v60 = vsel %vm7108_vm0, %v1565_v57, %v1483_v45  ;;  %v1567_v62 = vsel %vm7109_vm11, %v1564_v58, %v6072_v49  ;;  %1638 = vmatpush1.msra.mxu0 %v6123_v24  ;;  %v1744_v49 = vsub.f32 %v6155_v1, %v1743_v54  ;;  %v1601_v36 = vsel %vm323_vm2, %v6083_v53, 0 }
 0x2da   : > { %v6193_v16 = vand.u32 4294901760, %v1568_v60  ;;  %v6195_v7 = vand.u32 4294901760, %v1567_v62  ;;  %v1737_v22 = vand.u32 4294901760, %v6177_v55  ;;  %v1727_v27 = vand.u32 4294901760, %v1726_v0 }
 0x2db   : > { %v1745_v45 = vand.u32 4294901760, %v1744_v49  ;;  %v1584_v20 = vsel %vm7110_vm5, %v1581_v38, %v6116_v4  ;;  %v6238_v53 = vand.u32 4294901760, %v1601_v36  ;;  %v1566_v12 = vsel %vm323_vm2, %v6033_v21, %v6169_v47 }
 0x2dc   : > { %v1748_v25 = vsub.f32 %v1568_v60, %v6193_v16  ;;  %v1754_v26 = vsub.f32 %v1567_v62, %v6195_v7  ;;  %1640 = vmatprep.subr.mxu0 %v6193_v16  ;;  %v1738_v32 = vsub.f32 %v6177_v55, %v1737_v22  ;;  %1728 = vmatprep.subr.mxu1 %v1727_v27  ;;  %vm7111_vm11 = vcmask 1046528  }
 0x2dd   : > { %1642 = vmatpush1.msra.mxu0 %v6195_v7  ;;  %1734 = vmatpush1.msra.mxu1 %v1733_v33  ;;  %v1569_v21 = vsel %vm7112_vm7, %v1566_v12, %v6081_v52  ;;  %vm7113_vm0 = vmmov 0   ;;  %vm7114_vm5 = vcmask 220160   ;;  %vm7116_vm7 = vcmask 744448  }
 0x2de   : > { %1681 = vmatmul.mubr.f32.vlgmr.msra.gmra.mxu0 %v6191_v9  ;;  %v1739_v34 = vand.u32 4294901760, %v1738_v32  ;;  %v1749_v42 = vand.u32 4294901760, %v1748_v25  ;;  %v1755_v31 = vand.u32 4294901760, %v1754_v26  ;;  %1825 = vmatprep.subr.mxu0 %v6105_v15  ;;  %v1578_v15 = vsel %vm7111_vm11, %v1575_v48, %v6102_v14 }
 0x2df   : > { %1828 = vmatpush1.msra.mxu0 %v6078_v50  ;;  %1879 = vmatprep.mubr.f32.mxu0 %v5588_v23  ;;  %v6251_v50 = vand.u32 4294901760, %v1584_v20  ;;  %v6262_v14 = vand.u32 4294901760, %v1578_v15  ;;  %v6269_v52 = vand.u32 4294901760, %v1569_v21  ;;  %vm7115_vm11 = vcmask 891904  }
 0x2e0   : > { %1740 = vmatprep.subr.mxu1 %v1739_v34  ;;  %v1750_v46 = vsub.f32 %v1748_v25, %v1749_v42  ;;  %v1756_v59 = vsub.f32 %v1754_v26, %v1755_v31  ;;  %1831 = vmatprep.subr.mxu0 %v6158_v13 }
 0x2e1   : > { %1746 = vmatpush1.msra.mxu1 %v1745_v45  ;;  %1834 = vmatpush1.msra.mxu0 %v6138_v28  ;;  %v6277_v28 = vsub.f32 %v1578_v15, %v6262_v14 }
 0x2e2   : > { %v1751_v40 = vand.u32 4294901760, %v1750_v46  ;;  %v1757_v39 = vand.u32 4294901760, %v1756_v59  ;;  %1837 = vmatprep.subr.mxu0 %v6177_v55 }
 0x2e3   : > { %1840 = vmatpush1.msra.mxu0 %v6155_v1  ;;  %v2272_v1 = vsub.f32 %v1569_v21, %v6269_v52  ;;  %v1592_v37 = vpop.permute.xlu0 %1591 }
 0x2e4   : > { %1752 = vmatprep.subr.mxu1 %v1751_v40  ;;  %1843 = vmatprep.subr.mxu0 %v1748_v25 }
 0x2e5   : > { %1758 = vmatpush1.msra.mxu1 %v1757_v39  ;;  %1846 = vmatpush1.msra.mxu0 %v1754_v26 }
 0x2e6   : > { %1793 = vmatmul.mubr.f32.vlgmr.msra.gmra.mxu1 %v6096_v8  ;;  %1913 = vmatprep.subr.mxu1 %v6094_v3 }
 0x2e7   : > { %1997 = vmatprep.subr.mxu0 %v1713_v18  ;;  %1882 = vmatmul.mubr.f32.vlgmr.msra.gmra.mxu0 %v6114_v19  ;;  %v6267_v18 = vsub.f32 %v1584_v20, %v6251_v50 }
 0x2e8   : > { %1915 = vmatpush1.msra.mxu1 %v6065_v30  ;;  %2001 = vmatpush1.msra.mxu0 %v1719_v6  ;;  %v6260_v6 = vsub.f32 %v1601_v36, %v6238_v53 }
 0x2e9   : > { %1917 = vmatprep.subr.mxu1 %v6146_v2  ;;  %2005 = vmatprep.subr.mxu0 %v1725_v17  ;;  %v2259_v29 = vand.u32 4294901760, %v6267_v18 }
 0x2ea   : > { %1919 = vmatpush1.msra.mxu1 %v6110_v11  ;;  %2009 = vmatpush1.msra.mxu0 %v1731_v35  ;;  %v2252_v4 = vand.u32 4294901760, %v6260_v6 }
 0x2eb   : > { %1921 = vmatprep.subr.mxu1 %v6167_v43  ;;  %2013 = vmatprep.subr.mxu0 %v1737_v22 }
 0x2ec   : > { %1923 = vmatpush1.msra.mxu1 %v6123_v24  ;;  %2017 = vmatpush1.msra.mxu0 %v1743_v54 }
 0x2ed   : > { %1925 = vmatprep.subr.mxu1 %v6193_v16  ;;  %2021 = vmatprep.subr.mxu0 %v1749_v42 }
 0x2ee   : > { %1927 = vmatpush1.msra.mxu1 %v6195_v7  ;;  %1960 = vmatprep.mubr.f32.mxu1 %v5588_v23 }
 0x2ef   : > { %2025 = vmatpush1.msra.mxu0 %v1755_v31  ;;  %1964 = vmatmul.mubr.f32.vlgmr.msra.gmra.mxu1 %v6142_v44 }
 0x2f0   : > { %2058 = vmatprep.mubr.f32.mxu0 %v5588_v23  ;;  %2091 = vmatprep.subr.mxu1 %v6094_v3  ;;  %v2253_v3 = vsub.f32 %v6260_v6, %v2252_v4 }
 0x2f1   : > { %5325 = vmatprep.subr.mxu0 %v5588_v23  ;;  %2060 = vmatmul.mubr.f32.vlgmr.msra.gmra.mxu0 %v6096_v8 }
 0x2f2   : > { %2093 = vmatpush1.msra.mxu1 %v6065_v30  ;;  %5326 = vmatpush3.msra.mxu0 %v6238_v53  ;;  %v2266_v30 = vand.u32 4294901760, %v6277_v28 }
 0x2f3   : > { %2095 = vmatprep.subr.mxu1 %v6146_v2  ;;  %5327 = vmatprep.subr.mxu0 %v5588_v23  ;;  %v2273_v2 = vand.u32 4294901760, %v2272_v1 }
 0x2f4   : > { %2097 = vmatpush1.msra.mxu1 %v6110_v11  ;;  %5328 = vmatpush3.msra.mxu0 %v6251_v50  ;;  %v2260_v11 = vsub.f32 %v6267_v18, %v2259_v29  ;;  %v2267_v13 = vsub.f32 %v6277_v28, %v2266_v30 }
 0x2f5   : > { %2099 = vmatprep.subr.mxu1 %v6167_v43  ;;  %5329 = vmatprep.subr.mxu0 %v5588_v23  ;;  %v2274_v43 = vsub.f32 %v2272_v1, %v2273_v2 }
 0x2f6   : > { %2101 = vmatpush1.msra.mxu1 %v6123_v24  ;;  %5330 = vmatpush3.msra.mxu0 %v6262_v14  ;;  %v2254_v24 = vand.u32 4294901760, %v2253_v3  ;;  %v2261_v35 = vand.u32 4294901760, %v2260_v11  ;;  %v2268_v47 = vand.u32 4294901760, %v2267_v13 }
 0x2f7   : > { %2103 = vmatprep.subr.mxu1 %v6193_v16  ;;  %5331 = vmatprep.subr.mxu0 %v5588_v23  ;;  %v2275_v17 = vand.u32 4294901760, %v2274_v43 }
 0x2f8   : > { %2105 = vmatpush1.msra.mxu1 %v6195_v7  ;;  %2138 = vmatprep.mubr.f32.mxu1 %v5588_v23 }
 0x2f9   : > { %5332 = vmatpush3.msra.mxu0 %v6269_v52  ;;  %5333 = vmatprep.mubr.msk.f32.mxu0 %vm7113_vm0, %v5588_v23 }
 0x2fa   : > { %2140 = vmatmul.mubr.f32.vlgmr.msra.gmra.mxu1 %v6096_v8  ;;  %5334 = vmatmul.mubr.f32.vlgmr.msra.gmra.mxu0 %v6191_v9 }
 0x2fb   : > { %5336 = vmatprep.subr.mxu1 %v5588_v23  ;;  %5347 = vmatprep.subr.mxu0 %v5588_v23 }
 0x2fc   : > { %5337 = vmatpush3.msra.mxu1 %v2254_v24  ;;  %5348 = vmatpush3.msra.mxu0 %v6260_v6 }
 0x2fd   : > { %5338 = vmatprep.subr.mxu1 %v5588_v23  ;;  %5349 = vmatprep.subr.mxu0 %v5588_v23 }
 0x2fe   : > { %5339 = vmatpush3.msra.mxu1 %v2261_v35  ;;  %5350 = vmatpush3.msra.mxu0 %v6267_v18 }
 0x2ff   : > { %5340 = vmatprep.subr.mxu1 %v5588_v23  ;;  %5351 = vmatprep.subr.mxu0 %v5588_v23 }
 0x300   : > { %5341 = vmatpush3.msra.mxu1 %v2268_v47  ;;  %5352 = vmatpush3.msra.mxu0 %v6277_v28 }
 0x301   : > { %5342 = vmatprep.subr.mxu1 %v5588_v23  ;;  %5353 = vmatprep.subr.mxu0 %v5588_v23 }
 0x302   : > { %5343 = vmatpush3.msra.mxu1 %v2275_v17  ;;  %5344 = vmatprep.mubr.msk.f32.mxu1 %vm7113_vm0, %v5588_v23 }
 0x303   : > { %5354 = vmatpush3.msra.mxu0 %v2272_v1  ;;  %5345 = vmatmul.mubr.f32.vlgmr.msra.gmra.mxu1 %v6096_v8 }
 0x304   : > { %5355 = vmatprep.mubr.msk.f32.mxu0 %vm7113_vm0, %v5588_v23  ;;  %5358 = vmatprep.subr.mxu1 %v5588_v23 }
 0x305   : > { %5369 = vmatprep.subr.mxu0 %v5588_v23  ;;  %5356 = vmatmul.mubr.f32.vlgmr.msra.gmra.mxu0 %v6114_v19 }
 0x306   : > { %5359 = vmatpush3.msra.mxu1 %v6238_v53  ;;  %5370 = vmatpush3.msra.mxu0 %v2252_v4 }
 0x307   : > { %5360 = vmatprep.subr.mxu1 %v5588_v23  ;;  %5371 = vmatprep.subr.mxu0 %v5588_v23 }
 0x308   : > { %5361 = vmatpush3.msra.mxu1 %v6251_v50  ;;  %5372 = vmatpush3.msra.mxu0 %v2259_v29 }
 0x309   : > { %5362 = vmatprep.subr.mxu1 %v5588_v23  ;;  %5373 = vmatprep.subr.mxu0 %v5588_v23 }
 0x30a   : > { %5363 = vmatpush3.msra.mxu1 %v6262_v14  ;;  %5374 = vmatpush3.msra.mxu0 %v2266_v30 }
 0x30b   : > { %5364 = vmatprep.subr.mxu1 %v5588_v23  ;;  %5375 = vmatprep.subr.mxu0 %v5588_v23 }
 0x30c   : > { %5365 = vmatpush3.msra.mxu1 %v6269_v52  ;;  %5366 = vmatprep.mubr.msk.f32.mxu1 %vm7113_vm0, %v5588_v23 }
 0x30d   : > { %5376 = vmatpush3.msra.mxu0 %v2273_v2  ;;  %5367 = vmatmul.mubr.f32.vlgmr.msra.gmra.mxu1 %v6142_v44 }
 0x30e   : > { %5380 = vmatprep.subr.mxu1 %v5588_v23  ;;  %5377 = vmatprep.mubr.msk.f32.mxu0 %vm7113_vm0, %v5588_v23 }
 0x30f   : > { %5381 = vmatpush3.msra.mxu1 %v6238_v53  ;;  %5378 = vmatmul.mubr.f32.vlgmr.msra.gmra.mxu0 %v6096_v8 }
 0x310   : > { %5382 = vmatprep.subr.mxu1 %v5588_v23  ;;  %5388 = vmatprep.mubr.msk.f32.mxu1 %vm7113_vm0, %v5588_v23 }
 0x311   : > { %5383 = vmatpush3.msra.mxu1 %v6251_v50  ;;  %2889 = vmatprep.mubr.f32.mxu0 %v5588_v23 }
 0x312   : > { %5384 = vmatprep.subr.mxu1 %v5588_v23 }
 0x313   : > { %5385 = vmatpush3.msra.mxu1 %v6262_v14 }
 0x314   : > { %5386 = vmatprep.subr.mxu1 %v5588_v23 }
 0x315   : > { %5387 = vmatpush3.msra.mxu1 %v6269_v52 }
 0x316   : > { %5389 = vmatmul.mubr.f32.vlgmr.msra.gmra.mxu1 %v6096_v8 }
 0x317   : > { %3005 = vmatprep.mubr.f32.mxu1 %v5588_v23 }
 0x39e   : > { %v1682_v19 = vpop.f32.mrf.mxu0 }
 0x39f   : > { %v1683_v54 = vadd.f32 %v1682_v19, %v1592_v37 }
 0x3a0   : > { %v1684_v51 = vpop.f32.mrf.mxu0 }
 0x3a1   : > { %v1685_v58 = vadd.f32 %v1684_v51, %v1592_v37 }
 0x3a6   : > { %v1794_v44 = vpop.f32.mrf.mxu1 }
 0x3a7   : > { %v1883_v57 = vpop.f32.mrf.mxu0  ;;  %v1795_v60 = vadd.f32 %v1794_v44, %v1683_v54 }
 0x3a8   : > { %v1796_v55 = vpop.f32.mrf.mxu1 }
 0x3a9   : > { %v1797_v63 = vadd.f32 %v1796_v55, %v1685_v58  ;;  %v1885_v9 = vpop.f32.mrf.mxu0  ;;  %v1884_v16 = vadd.f32 %v1883_v57, %v1795_v60 }
 0x3ab   : > { %v1886_v22 = vadd.f32 %v1885_v9, %v1797_v63 }
 0x3af   : > { %v1965_v62 = vpop.f32.mrf.mxu1 }
 0x3b0   : > { %v1966_v49 = vadd.f32 %v1965_v62, %v1884_v16 }
 0x3b1   : > { %v1967_v7 = vpop.f32.mrf.mxu1  ;;  %v2061_v0 = vpop.f32.mrf.mxu0 }
 0x3b2   : > { %v1968_v8 = vadd.f32 %v1967_v7, %v1886_v22  ;;  %v2062_v26 = vadd.f32 %v2061_v0, %v1966_v49 }
 0x3b3   : > { %v2063_v25 = vpop.f32.mrf.mxu0 }
 0x3b4   : > { %v2064_v32 = vadd.f32 %v2063_v25, %v1968_v8 }
 0x3ba   : > { %v2141_v27 = vpop.f32.mrf.mxu1  ;;  %v2221_v34 = vpop.f32.mrf.mxu0 }
 0x3bb   : > { %v2142_v33 = vadd.f32 %v2141_v27, %v2062_v26  ;;  %v2222_v20 = vadd.f32 %v2221_v34, %v1592_v37 }
 0x3bc   : > { %v2143_v42 = vpop.f32.mrf.mxu1  ;;  %v5335_v46 = vpop.f32.mrf.mxu0 }
 0x3bd   : > { %v2631_v31 = vmax.f32 %v2142_v33, 0.0  ;;  %v2144_v45 = vadd.f32 %v2143_v42, %v2064_v32 }
 0x3bf   : > { %v2637_v59 = vmul.f32 0.70710677, %v2631_v31  ;;  %v2632_v40 = vmax.f32 %v2144_v45, 0.0  ;;  %v2634_v50 = vmul.f32 0.5, %v2631_v31 }
 0x3c1   : > { %5561 = verf.f32 %v2637_v59  ;;  %v2638_v39 = vmul.f32 0.70710677, %v2632_v40  ;;  %v2635_v28 = vmul.f32 0.5, %v2632_v40 }
 0x3c3   : > { %5563 = verf.f32 %v2638_v39  ;;  %v2312_v38 = vpop.f32.mrf.mxu1 }
 0x3c4   : > { %v2313_v53 = vadd.f32 %v2312_v38, %v2222_v20 }
 0x3c5   : > { %v2392_v36 = vpop.f32.mrf.mxu0  ;;  %v5346_v41 = vpop.f32.mrf.mxu1 }
 0x3c6   : > { %v2393_v6 = vadd.f32 %v2392_v36, %v2313_v53 }
 0x3c7   : > { %v5357_v48 = vpop.f32.mrf.mxu0 }
 0x3c8   : > { %v5134_v48 = vld [vmem:[%s7087_s2 + $0x8] sm:$0x7] }
 0x3cd   : > { %v2469_v15 = vpop.f32.mrf.mxu1 }
 0x3ce   : > { %v5562_v12 = vpop.eup %5561  ;;  %v2470_v1 = vadd.f32 %v2469_v15, %v2393_v6 }
 0x3cf   : > { %v2643_v21 = vadd.f32 1.0, %v5562_v12  ;;  %v2552_v18 = vpop.f32.mrf.mxu0  ;;  %v5368_v52 = vpop.f32.mrf.mxu1 }
 0x3d0   : > { %v5564_v14 = vpop.eup %5563  ;;  %v2553_v2 = vadd.f32 %v2552_v18, %v2470_v1 }
 0x3d1   : > { %v2646_v4 = vmul.f32 %v2643_v21, %v2634_v50  ;;  %v2644_v29 = vadd.f32 1.0, %v5564_v14  ;;  %v5379_v3 = vpop.f32.mrf.mxu0 }
 0x3d3   : > { %v2647_v30 = vmul.f32 %v2644_v29, %v2635_v28  ;;  %v2649_v11 = vmul.f32 %v2646_v4, %v5980_v5 }
 0x3d5   : > { %v2650_v24 = vmul.f32 %v2647_v30, %v5982_v10 }
 0x3d6   : > { %v2627_v13 = vpop.f32.mrf.mxu1 }
 0x3d7   : > { %v2628_v35 = vadd.f32 %v2627_v13, %v2553_v2  ;;  %v2655_v43 = vcombine.low %v2649_v11, %v2650_v24  ;;  %v5133_v24 = vld [vmem:[%s7086_s1 + $0x8] sm:$0x7] }
 0x3d8   : > { %v5390_v47 = vpop.f32.mrf.mxu1 }
 0x3d9   : > { %v2633_v17 = vmax.f32 %v2628_v35, 0.0  ;;  %2656 = vrot.lane.b32.xlu1 %v2655_v43, %s5592_s9 }
 0x3db   : > { %v2639_v19 = vmul.f32 0.70710677, %v2633_v17  ;;  %v2636_v37 = vmul.f32 0.5, %v2633_v17 }
 0x3dd   : > { %5565 = verf.f32 %v2639_v19 }
 0x3ea   : > { %v5566_v44 = vpop.eup %5565 }
 0x3eb   : > { %v2645_v51 = vadd.f32 1.0, %v5566_v44 }
 0x3ed   : > { %v2648_v54 = vmul.f32 %v2645_v51, %v2636_v37  ;;  %v2809_v37 = vsel %vm7114_vm5, %v5133_v24, 0  ;;  %vm7118_vm5 = vcmask 1046528  }
 0x3ef   : > { %v2651_v55 = vmul.f32 %v2648_v54, %v5987_v56 }
 0x3f1   : > { %2658 = vrot.lane.b32.xlu0 %v2651_v55, %s5592_s9 }
 0x44b   : > { %v2657_v57 = vpop.permute.xlu1 %2656 }
 0x44c   : > { %v2660_v58 = vrot.slane %v2657_v57, 4 }
 0x44e   : > { %v2661_v60 = vsel %vm1442_vm14, %v2660_v58, %v2657_v57 }
 0x44f   : > { %2665 = vst.msk [vmem:[#allocation2] sm:$0x77] %vm5991_vm6, %v2661_v60 }
 0x456   : > { %v6361_v62 = vld [vmem:[#allocation2] sm:$0x77] }
 0x457   : > { %2719 = vrot.lane.b32.xlu0 %v6361_v62, %s5587_s27  ;;  %2770 = vrot.lane.b32.xlu1 %v6361_v62, %s5581_s21  ;;  %v2728_v63 = vrot.slane %v6361_v62, 1  ;;  %v6370_v9 = vcombine.high %v6361_v62, %v6361_v62  ;;  %v2687_v16 = vrot.slane %v6361_v62, 2  ;;  %v2742_v7 = vrot.slane %v6361_v62, 6 }
 0x458   : > { %v2756_v0 = vrot.slane %v6361_v62, 3  ;;  %v2701_v22 = vrot.slane %v6361_v62, 7  ;;  %v2715_v25 = vcombine.low %v6361_v62, %v6361_v62  ;;  %v2673_v41 = vrot.slane %v6361_v62, 5 }
 0x459   : > { %v2688_v26 = vrot.slane %v6370_v9, 2  ;;  %v2729_v27 = vrot.slane %v6370_v9, 1  ;;  %v2702_v32 = vrot.slane %v6370_v9, 7  ;;  %v2743_v33 = vrot.slane %v6370_v9, 6 }
 0x45a   : > { %v2757_v34 = vrot.slane %v6370_v9, 3  ;;  %v2674_v38 = vrot.slane %v6370_v9, 5 }
 0x45b   : > { %2731 = vrot.lane.b32.xlu0 %v2728_v63, %s5582_s22  ;;  %2772 = vrot.lane.b32.xlu1 %v6370_v9, %s5581_s21 }
 0x45f   : > { %2690 = vrot.lane.b32.xlu0 %v2687_v16, %s5584_s24  ;;  %2745 = vrot.lane.b32.xlu1 %v2742_v7, %s5583_s23 }
 0x463   : > { %v2659_v49 = vpop.permute.xlu0 %2658  ;;  %2759 = vrot.lane.b32.xlu0 %v2756_v0, %s5586_s26  ;;  %2704 = vrot.lane.b32.xlu1 %v2701_v22, %s5585_s25 }
 0x464   : > { %v2662_v8 = vsel %vm1442_vm14, %v2660_v58, %v2659_v49  ;;  %v6465_v49 = vand.u32 4294901760, %v2809_v37 }
 0x465   : > { %2666 = vst.msk [vmem:[#allocation2 + $0x8] sm:$0x7] %vm7099_vm15, %v2662_v8  ;;  %vm7117_vm15 = vcmask 1044480  }
 0x467   : > { %2717 = vrot.lane.b32.xlu1 %v2715_v25, %s5587_s27  ;;  %2692 = vrot.lane.b32.xlu0 %v2688_v26, %s5584_s24 }
 0x46b   : > { %2733 = vrot.lane.b32.xlu1 %v2729_v27, %s5582_s22  ;;  %2706 = vrot.lane.b32.xlu0 %v2702_v32, %s5585_s25 }
 0x46c   : > { %v6396_v42 = vld [vmem:[#allocation2 + $0x8] sm:$0x7] }
 0x46d   : > { %v2689_v31 = vrot.slane %v6396_v42, 2  ;;  %v2703_v45 = vrot.slane %v6396_v42, 7  ;;  %v2730_v46 = vrot.slane %v6396_v42, 1  ;;  %v2758_v59 = vrot.slane %v6396_v42, 3 }
 0x46e   : > { %v2744_v40 = vrot.slane %v6396_v42, 6  ;;  %v2716_v39 = vcombine.low %v6396_v42, %v6396_v42  ;;  %v2675_v36 = vrot.slane %v6396_v42, 5 }
 0x46f   : > { %2747 = vrot.lane.b32.xlu1 %v2743_v33, %s5583_s23  ;;  %2761 = vrot.lane.b32.xlu0 %v2757_v34, %s5586_s26 }
 0x473   : > { %2694 = vrot.lane.b32.xlu1 %v2689_v31, %s5584_s24  ;;  %2774 = vrot.lane.b32.xlu0 %v6396_v42, %s5581_s21 }
 0x477   : > { %2708 = vrot.lane.b32.xlu1 %v2703_v45, %s5585_s25  ;;  %2735 = vrot.lane.b32.xlu0 %v2730_v46, %s5582_s22  ;;  %v6486_v45 = vsub.f32 %v2809_v37, %v6465_v49 }
 0x47b   : > { %2763 = vrot.lane.b32.xlu1 %v2758_v59, %s5586_s26  ;;  %2749 = vrot.lane.b32.xlu0 %v2744_v40, %s5583_s23 }
 0x47f   : > { %2721 = vrot.lane.b32.xlu1 %v2716_v39, %s5587_s27  ;;  %2678 = vrot.lane.b32.xlu0 %v2674_v38, %s5589_s28 }
 0x483   : > { %2680 = vrot.lane.b32.xlu1 %v2675_v36, %s5589_s28  ;;  %2676 = vrot.lane.b32.xlu0 %v2673_v41, %s5589_s28 }
 0x487   : > { %2805 = vperm.xlu1 %5545, %v5134_v48  }
 0x4c9   : > { %v6424_v20 = vpop.permute.xlu0 %2719  ;;  %v2771_v53 = vpop.permute.xlu1 %2770 }
 0x4cd   : > { %v2732_v12 = vpop.permute.xlu0 %2731  ;;  %v2773_v15 = vpop.permute.xlu1 %2772 }
 0x4ce   : > { %v2776_v4 = vsel %vm320_vm1, %v2771_v53, %v2773_v15 }
 0x4cf   : > { %v2811_v1 = vsel %vm323_vm2, %v2776_v4, 0 }
 0x4d0   : > { %v6428_v3 = vand.u32 4294901760, %v2811_v1 }
 0x4d1   : > { %v2691_v50 = vpop.permute.xlu0 %2690  ;;  %v2746_v21 = vpop.permute.xlu1 %2745 }
 0x4d2   : > { %v6441_v47 = vsub.f32 %v2811_v1, %v6428_v3 }
 0x4d4   : > { %v2933_v16 = vand.u32 4294901760, %v6441_v47 }
 0x4d5   : > { %v2760_v6 = vpop.permute.xlu0 %2759  ;;  %v2705_v14 = vpop.permute.xlu1 %2704 }
 0x4d6   : > { %v2934_v34 = vsub.f32 %v6441_v47, %v2933_v16 }
 0x4d9   : > { %v2718_v18 = vpop.permute.xlu1 %2717  ;;  %v2693_v52 = vpop.permute.xlu0 %2692 }
 0x4da   : > { %v6435_v13 = vsel %vm234_vm10, %v2691_v50, %v2693_v52  ;;  %v2723_v51 = vsel %vm7115_vm11, %v2718_v18, %v6424_v20  ;;  %vm7120_vm11 = vcmask 1044480  }
 0x4dd   : > { %v2734_v28 = vpop.permute.xlu1 %2733  ;;  %v2707_v29 = vpop.permute.xlu0 %2706 }
 0x4de   : > { %v2710_v30 = vsel %vm249_vm9, %v2705_v14, %v2707_v29  ;;  %v2737_v17 = vsel %vm278_vm4, %v2732_v12, %v2734_v28 }
 0x4df   : > { %v2784_v43 = vsel %vm331_vm13, %v6435_v13, %v2710_v30 }
 0x4e0   : > { %v2787_v58 = vsel %vm335_vm12, %v2784_v43, %v2723_v51 }
 0x4e1   : > { %v2748_v2 = vpop.permute.xlu1 %2747  ;;  %v2762_v11 = vpop.permute.xlu0 %2761  ;;  %v2790_v25 = vsel %vm7118_vm5, %v2787_v58, %v2737_v17 }
 0x4e2   : > { %v2751_v35 = vsel %vm293_vm3, %v2746_v21, %v2748_v2  ;;  %v2765_v55 = vsel %vm7116_vm7, %v2760_v6, %v2762_v11  ;;  %v6483_v31 = vand.u32 4294901760, %v2790_v25  ;;  %v2935_v6 = vand.u32 4294901760, %v2934_v34 }
 0x4e3   : > { %v2793_v54 = vsel %vm343_vm8, %v2737_v17, %v2751_v35 }
 0x4e4   : > { %v2796_v7 = vsel %vm7117_vm15, %v2793_v54, %v2765_v55  ;;  %vm7119_vm15 = vmmov %vm7116_vm7  ;;  %vm7121_vm7 = vcmask 891904   ;;  %v6515_v4 = vsub.f32 %v2790_v25, %v6483_v31 }
 0x4e5   : > { %v6444_v19 = vpop.permute.xlu1 %2694  ;;  %v6446_v44 = vpop.permute.xlu0 %2774  ;;  %v6473_v26 = vand.u32 4294901760, %v2796_v7 }
 0x4e6   : > { %v2777_v57 = vsel %vm320_vm1, %v2773_v15, %v6446_v44  ;;  %v2697_v12 = vsel %vm234_vm10, %v2693_v52, %v6444_v19  ;;  %v2957_v37 = vand.u32 4294901760, %v6515_v4 }
 0x4e7   : > { %v2813_v60 = vsel %vm323_vm2, %v2777_v57, 0  ;;  %v6501_v41 = vsub.f32 %v2796_v7, %v6473_v26 }
 0x4e8   : > { %v6457_v63 = vand.u32 4294901760, %v2813_v60 }
 0x4e9   : > { %v6461_v0 = vpop.permute.xlu1 %2708  ;;  %v6463_v22 = vpop.permute.xlu0 %2735  ;;  %v2945_v1 = vand.u32 4294901760, %v6501_v41 }
 0x4ea   : > { %v6468_v8 = vsub.f32 %v2813_v60, %v6457_v63  ;;  %2842 = vmatprep.subr.mxu0 %v6457_v63  ;;  %v2738_v46 = vsel %vm278_vm4, %v2734_v28, %v6463_v22  ;;  %v2711_v38 = vsel %vm249_vm9, %v2707_v29, %v6461_v0  ;;  %v6518_v28 = vand.u32 4294901760, %v6486_v45 }
 0x4eb   : > { %2844 = vmatpush1.msra.mxu0 %v6428_v3  ;;  %v2785_v14 = vsel %vm331_vm13, %v2697_v12, %v2711_v38  ;;  %v2946_v60 = vsub.f32 %v6501_v41, %v2945_v1 }
 0x4ec   : > { %v2927_v27 = vand.u32 4294901760, %v6468_v8  ;;  %v2893_v17 = vsub.f32 %v6486_v45, %v6518_v28 }
 0x4ed   : > { %v6476_v32 = vpop.permute.xlu1 %2763  ;;  %v6478_v33 = vpop.permute.xlu0 %2749  ;;  %v2947_v38 = vand.u32 4294901760, %v2946_v60 }
 0x4ee   : > { %v2766_v59 = vsel %vm7119_vm15, %v2762_v11, %v6476_v32  ;;  %v2752_v40 = vsel %vm293_vm3, %v2748_v2, %v6478_v33  ;;  %v2928_v39 = vsub.f32 %v6468_v8, %v2927_v27  ;;  %vm7122_vm15 = vcmask 1039360  }
 0x4ef   : > { %v2794_v36 = vsel %vm343_vm8, %v2738_v46, %v2752_v40  ;;  %v6562_v34 = vand.u32 4294901760, %v2893_v17 }
 0x4f0   : > { %v2797_v48 = vsel %vm7120_vm11, %v2794_v36, %v2766_v59  ;;  %v2929_v53 = vand.u32 4294901760, %v2928_v39  ;;  %vm7123_vm11 = vmmov %vm7122_vm15 }
 0x4f1   : > { %v6506_v15 = vand.u32 4294901760, %v2797_v48  ;;  %v6508_v50 = vpop.permute.xlu1 %2721  ;;  %v2679_v21 = vpop.permute.xlu0 %2678 }
 0x4f2   : > { %v2724_v18 = vsel %vm7121_vm7, %v6424_v20, %v6508_v50  ;;  %2930 = vmatprep.subr.mxu1 %v2929_v53  ;;  %vm7124_vm7 = vcmask 1045504  }
 0x4f3   : > { %v6521_v52 = vsub.f32 %v2797_v48, %v6506_v15  ;;  %v2788_v29 = vsel %vm335_vm12, %v2785_v14, %v2724_v18  ;;  %2846 = vmatprep.subr.mxu0 %v6506_v15  ;;  %2936 = vmatpush1.msra.mxu1 %v2935_v6 }
 0x4f4   : > { %v2791_v30 = vsel %vm7118_vm5, %v2788_v29, %v2738_v46  ;;  %2848 = vmatpush1.msra.mxu0 %v6473_v26  ;;  %vm7125_vm5 = vmmov %vm7124_vm7  ;;  %v2795_v29 = vsel %vm343_vm8, %v6463_v22, %v6478_v33 }
 0x4f5   : > { %v6528_v20 = vand.u32 4294901760, %v2791_v30  ;;  %v6530_v2 = vpop.permute.xlu1 %2680  ;;  %v2677_v11 = vpop.permute.xlu0 %2676  ;;  %v2939_v24 = vand.u32 4294901760, %v6521_v52 }
 0x4f6   : > { %v2683_v35 = vsel %vm7122_vm15, %v2679_v21, %v6530_v2  ;;  %v2682_v43 = vsel %vm7123_vm11, %v2677_v11, %v2679_v21  ;;  %v2786_v11 = vsel %vm331_vm13, %v6444_v19, %v6461_v0  ;;  %vm7126_vm15 = vcmask 1044480  }
 0x4f7   : > { %v6540_v51 = vsub.f32 %v2791_v30, %v6528_v20  ;;  %v2779_v54 = vsel %vm323_vm2, %v6370_v9, %v2683_v35  ;;  %v2778_v55 = vsel %vm323_vm2, %v6361_v62, %v2682_v43  ;;  %2850 = vmatprep.subr.mxu0 %v6528_v20  ;;  %v2940_v62 = vsub.f32 %v6521_v52, %v2939_v24 }
 0x4f8   : > { %v2782_v57 = vsel %vm7124_vm7, %v2779_v54, %v2697_v12  ;;  %v2781_v58 = vsel %vm7125_vm5, %v2778_v55, %v6435_v13  ;;  %2852 = vmatpush1.msra.mxu0 %v6483_v31  ;;  %v2958_v13 = vsub.f32 %v6515_v4, %v2957_v37  ;;  %v2815_v30 = vsel %vm323_vm2, %v6446_v44, 0  ;;  %vm7128_vm7 = vmmov %vm7125_vm5 }
 0x4f9   : > { %v6554_v7 = vand.u32 4294901760, %v2782_v57  ;;  %v6556_v25 = vand.u32 4294901760, %v2781_v58  ;;  %v2951_v9 = vand.u32 4294901760, %v6540_v51  ;;  %v2941_v40 = vand.u32 4294901760, %v2940_v62 }
 0x4fa   : > { %v2959_v12 = vand.u32 4294901760, %v2958_v13  ;;  %v2789_v35 = vsel %vm335_vm12, %v2786_v11, %v6508_v50  ;;  %v2798_v33 = vsel %vm7126_vm15, %v2795_v29, %v6476_v32  ;;  %v6601_v44 = vand.u32 4294901760, %v2815_v30 }
 0x4fb   : > { %v2962_v46 = vsub.f32 %v2782_v57, %v6554_v7  ;;  %v2968_v59 = vsub.f32 %v2781_v58, %v6556_v25  ;;  %2854 = vmatprep.subr.mxu0 %v6554_v7  ;;  %v2952_v39 = vsub.f32 %v6540_v51, %v2951_v9  ;;  %2942 = vmatprep.subr.mxu1 %v2941_v40  ;;  %vm7127_vm11 = vcmask 1046528  }
 0x4fc   : > { %2856 = vmatpush1.msra.mxu0 %v6556_v25  ;;  %2948 = vmatpush1.msra.mxu1 %v2947_v38  ;;  %v2780_v0 = vsel %vm323_vm2, %v6396_v42, %v6530_v2  ;;  %vm7131_vm5 = vcmask 891904   ;;  %vm7132_vm15 = vcmask 744448  }
 0x4fd   : > { %3039 = vmatprep.subr.mxu0 %v6468_v8  ;;  %v2953_v36 = vand.u32 4294901760, %v2952_v39  ;;  %v2963_v48 = vand.u32 4294901760, %v2962_v46  ;;  %v2969_v53 = vand.u32 4294901760, %v2968_v59  ;;  %2895 = vmatmul.mubr.f32.vlgmr.msra.gmra.mxu0 %v6562_v34  ;;  %v2792_v8 = vsel %vm7127_vm11, %v2789_v35, %v6463_v22 }
 0x4fe   : > { %3042 = vmatpush1.msra.mxu0 %v6441_v47  ;;  %3093 = vmatprep.mubr.f32.mxu0 %v5588_v23  ;;  %v6614_v47 = vand.u32 4294901760, %v2798_v33  ;;  %v2783_v42 = vsel %vm7128_vm7, %v2780_v0, %v6444_v19  ;;  %v6625_v22 = vand.u32 4294901760, %v2792_v8  ;;  %vm7133_vm11 = vcmask 1044480   ;;  %vm7135_vm7 = vmmov %vm7132_vm15 }
 0x4ff   : > { %2954 = vmatprep.subr.mxu1 %v2953_v36  ;;  %v2964_v21 = vsub.f32 %v2962_v46, %v2963_v48  ;;  %v2970_v6 = vsub.f32 %v2968_v59, %v2969_v53  ;;  %3045 = vmatprep.subr.mxu0 %v6521_v52  ;;  %v6632_v19 = vand.u32 4294901760, %v2783_v42 }
 0x500   : > { %2960 = vmatpush1.msra.mxu1 %v2959_v12  ;;  %3048 = vmatpush1.msra.mxu0 %v6501_v41  ;;  %v6640_v41 = vsub.f32 %v2792_v8, %v6625_v22 }
 0x501   : > { %v2965_v14 = vand.u32 4294901760, %v2964_v21  ;;  %v2971_v18 = vand.u32 4294901760, %v2970_v6  ;;  %3051 = vmatprep.subr.mxu0 %v6540_v51 }
 0x502   : > { %3054 = vmatpush1.msra.mxu0 %v6515_v4  ;;  %v3486_v4 = vsub.f32 %v2783_v42, %v6632_v19 }
 0x503   : > { %2966 = vmatprep.subr.mxu1 %v2965_v14  ;;  %3057 = vmatprep.subr.mxu0 %v2962_v46 }
 0x504   : > { %2972 = vmatpush1.msra.mxu1 %v2971_v18  ;;  %3060 = vmatpush1.msra.mxu0 %v2968_v59 }
 0x505   : > { %3007 = vmatmul.mubr.f32.vlgmr.msra.gmra.mxu1 %v6465_v49  ;;  %3127 = vmatprep.subr.mxu1 %v6457_v63 }
 0x506   : > { %3211 = vmatprep.subr.mxu0 %v2927_v27  ;;  %3096 = vmatmul.mubr.f32.vlgmr.msra.gmra.mxu0 %v6486_v45  ;;  %v6630_v27 = vsub.f32 %v2798_v33, %v6614_v47 }
 0x507   : > { %3129 = vmatpush1.msra.mxu1 %v6428_v3  ;;  %3215 = vmatpush1.msra.mxu0 %v2933_v16  ;;  %v6623_v16 = vsub.f32 %v2815_v30, %v6601_v44 }
 0x508   : > { %3131 = vmatprep.subr.mxu1 %v6506_v15  ;;  %3219 = vmatprep.subr.mxu0 %v2939_v24  ;;  %v3473_v50 = vand.u32 4294901760, %v6630_v27 }
 0x509   : > { %3133 = vmatpush1.msra.mxu1 %v6473_v26  ;;  %3223 = vmatpush1.msra.mxu0 %v2945_v1  ;;  %v3466_v32 = vand.u32 4294901760, %v6623_v16 }
 0x50a   : > { %3135 = vmatprep.subr.mxu1 %v6528_v20  ;;  %3227 = vmatprep.subr.mxu0 %v2951_v9 }
 0x50b   : > { %3137 = vmatpush1.msra.mxu1 %v6483_v31  ;;  %3231 = vmatpush1.msra.mxu0 %v2957_v37 }
 0x50c   : > { %3139 = vmatprep.subr.mxu1 %v6554_v7  ;;  %3235 = vmatprep.subr.mxu0 %v2963_v48 }
 0x50d   : > { %3141 = vmatpush1.msra.mxu1 %v6556_v25  ;;  %3174 = vmatprep.mubr.f32.mxu1 %v5588_v23 }
 0x50e   : > { %3239 = vmatpush1.msra.mxu0 %v2969_v53  ;;  %3178 = vmatmul.mubr.f32.vlgmr.msra.gmra.mxu1 %v6518_v28 }
 0x50f   : > { %3272 = vmatprep.mubr.f32.mxu0 %v5588_v23  ;;  %3305 = vmatprep.subr.mxu1 %v6457_v63  ;;  %v3467_v63 = vsub.f32 %v6623_v16, %v3466_v32 }
 0x510   : > { %5391 = vmatprep.subr.mxu0 %v5588_v23  ;;  %3274 = vmatmul.mubr.f32.vlgmr.msra.gmra.mxu0 %v6465_v49 }
 0x511   : > { %3307 = vmatpush1.msra.mxu1 %v6428_v3  ;;  %5392 = vmatpush3.msra.mxu0 %v6601_v44  ;;  %v3480_v3 = vand.u32 4294901760, %v6640_v41 }
 0x512   : > { %3309 = vmatprep.subr.mxu1 %v6506_v15  ;;  %5393 = vmatprep.subr.mxu0 %v5588_v23  ;;  %v3487_v15 = vand.u32 4294901760, %v3486_v4 }
 0x513   : > { %3311 = vmatpush1.msra.mxu1 %v6473_v26  ;;  %5394 = vmatpush3.msra.mxu0 %v6614_v47  ;;  %v3474_v26 = vsub.f32 %v6630_v27, %v3473_v50  ;;  %v3481_v52 = vsub.f32 %v6640_v41, %v3480_v3 }
 0x514   : > { %3313 = vmatprep.subr.mxu1 %v6528_v20  ;;  %5395 = vmatprep.subr.mxu0 %v5588_v23  ;;  %v3488_v20 = vsub.f32 %v3486_v4, %v3487_v15 }
 0x515   : > { %3315 = vmatpush1.msra.mxu1 %v6483_v31  ;;  %5396 = vmatpush3.msra.mxu0 %v6625_v22  ;;  %v3468_v31 = vand.u32 4294901760, %v3467_v63  ;;  %v3475_v1 = vand.u32 4294901760, %v3474_v26  ;;  %v3482_v2 = vand.u32 4294901760, %v3481_v52 }
 0x516   : > { %3317 = vmatprep.subr.mxu1 %v6554_v7  ;;  %5397 = vmatprep.subr.mxu0 %v5588_v23  ;;  %v3489_v24 = vand.u32 4294901760, %v3488_v20 }
 0x517   : > { %3319 = vmatpush1.msra.mxu1 %v6556_v25  ;;  %3352 = vmatprep.mubr.f32.mxu1 %v5588_v23 }
 0x518   : > { %5398 = vmatpush3.msra.mxu0 %v6632_v19  ;;  %5399 = vmatprep.mubr.msk.f32.mxu0 %vm7113_vm0, %v5588_v23 }
 0x519   : > { %3354 = vmatmul.mubr.f32.vlgmr.msra.gmra.mxu1 %v6465_v49  ;;  %5400 = vmatmul.mubr.f32.vlgmr.msra.gmra.mxu0 %v6562_v34 }
 0x51a   : > { %5402 = vmatprep.subr.mxu1 %v5588_v23  ;;  %5413 = vmatprep.subr.mxu0 %v5588_v23 }
 0x51b   : > { %5403 = vmatpush3.msra.mxu1 %v3468_v31  ;;  %5414 = vmatpush3.msra.mxu0 %v6623_v16 }
 0x51c   : > { %5404 = vmatprep.subr.mxu1 %v5588_v23  ;;  %5415 = vmatprep.subr.mxu0 %v5588_v23 }
 0x51d   : > { %5405 = vmatpush3.msra.mxu1 %v3475_v1  ;;  %5416 = vmatpush3.msra.mxu0 %v6630_v27 }
 0x51e   : > { %5406 = vmatprep.subr.mxu1 %v5588_v23  ;;  %5417 = vmatprep.subr.mxu0 %v5588_v23 }
 0x51f   : > { %5407 = vmatpush3.msra.mxu1 %v3482_v2  ;;  %5418 = vmatpush3.msra.mxu0 %v6640_v41 }
 0x520   : > { %5408 = vmatprep.subr.mxu1 %v5588_v23  ;;  %5419 = vmatprep.subr.mxu0 %v5588_v23 }
 0x521   : > { %5409 = vmatpush3.msra.mxu1 %v3489_v24  ;;  %5410 = vmatprep.mubr.msk.f32.mxu1 %vm7113_vm0, %v5588_v23 }
 0x522   : > { %5420 = vmatpush3.msra.mxu0 %v3486_v4  ;;  %5411 = vmatmul.mubr.f32.vlgmr.msra.gmra.mxu1 %v6465_v49 }
 0x523   : > { %5421 = vmatprep.mubr.msk.f32.mxu0 %vm7113_vm0, %v5588_v23  ;;  %5424 = vmatprep.subr.mxu1 %v5588_v23 }
 0x524   : > { %5435 = vmatprep.subr.mxu0 %v5588_v23  ;;  %5422 = vmatmul.mubr.f32.vlgmr.msra.gmra.mxu0 %v6486_v45 }
 0x525   : > { %5425 = vmatpush3.msra.mxu1 %v6601_v44  ;;  %5436 = vmatpush3.msra.mxu0 %v3466_v32 }
 0x526   : > { %5426 = vmatprep.subr.mxu1 %v5588_v23  ;;  %5437 = vmatprep.subr.mxu0 %v5588_v23 }
 0x527   : > { %5427 = vmatpush3.msra.mxu1 %v6614_v47  ;;  %5438 = vmatpush3.msra.mxu0 %v3473_v50 }
 0x528   : > { %5428 = vmatprep.subr.mxu1 %v5588_v23  ;;  %5439 = vmatprep.subr.mxu0 %v5588_v23 }
 0x529   : > { %5429 = vmatpush3.msra.mxu1 %v6625_v22  ;;  %5440 = vmatpush3.msra.mxu0 %v3480_v3 }
 0x52a   : > { %5430 = vmatprep.subr.mxu1 %v5588_v23  ;;  %5441 = vmatprep.subr.mxu0 %v5588_v23 }
 0x52b   : > { %5431 = vmatpush3.msra.mxu1 %v6632_v19  ;;  %5432 = vmatprep.mubr.msk.f32.mxu1 %vm7113_vm0, %v5588_v23 }
 0x52c   : > { %5442 = vmatpush3.msra.mxu0 %v3487_v15  ;;  %5433 = vmatmul.mubr.f32.vlgmr.msra.gmra.mxu1 %v6518_v28  ;;  %v2806_v28 = vpop.permute.xlu1 %2805 }
 0x52d   : > { %5446 = vmatprep.subr.mxu1 %v5588_v23  ;;  %5443 = vmatprep.mubr.msk.f32.mxu0 %vm7113_vm0, %v5588_v23 }
 0x52e   : > { %5447 = vmatpush3.msra.mxu1 %v6601_v44  ;;  %5444 = vmatmul.mubr.f32.vlgmr.msra.gmra.mxu0 %v6465_v49 }
 0x52f   : > { %5448 = vmatprep.subr.mxu1 %v5588_v23  ;;  %5454 = vmatprep.mubr.msk.f32.mxu1 %vm7113_vm0, %v5588_v23 }
 0x530   : > { %5449 = vmatpush3.msra.mxu1 %v6614_v47  ;;  %4103 = vmatprep.mubr.f32.mxu0 %v5588_v23 }
 0x531   : > { %5450 = vmatprep.subr.mxu1 %v5588_v23 }
 0x532   : > { %5451 = vmatpush3.msra.mxu1 %v6625_v22 }
 0x533   : > { %5452 = vmatprep.subr.mxu1 %v5588_v23 }
 0x534   : > { %5453 = vmatpush3.msra.mxu1 %v6632_v19 }
 0x535   : > { %5455 = vmatmul.mubr.f32.vlgmr.msra.gmra.mxu1 %v6465_v49 }
 0x536   : > { %4219 = vmatprep.mubr.f32.mxu1 %v5588_v23 }
 0x5bd   : > { %v2896_v45 = vpop.f32.mrf.mxu0 }
 0x5be   : > { %v2897_v37 = vadd.f32 %v2896_v45, %v2806_v28 }
 0x5bf   : > { %v2898_v43 = vpop.f32.mrf.mxu0 }
 0x5c0   : > { %v2899_v51 = vadd.f32 %v2898_v43, %v2806_v28 }
 0x5c5   : > { %v3008_v17 = vpop.f32.mrf.mxu1 }
 0x5c6   : > { %v3097_v55 = vpop.f32.mrf.mxu0  ;;  %v3009_v57 = vadd.f32 %v3008_v17, %v2897_v37 }
 0x5c7   : > { %v3010_v54 = vpop.f32.mrf.mxu1 }
 0x5c8   : > { %v3011_v60 = vadd.f32 %v3010_v54, %v2899_v51  ;;  %v3099_v7 = vpop.f32.mrf.mxu0  ;;  %v3098_v25 = vadd.f32 %v3097_v55, %v3009_v57 }
 0x5ca   : > { %v3100_v34 = vadd.f32 %v3099_v7, %v3011_v60 }
 0x5ce   : > { %v3179_v58 = vpop.f32.mrf.mxu1 }
 0x5cf   : > { %v3180_v13 = vadd.f32 %v3179_v58, %v3098_v25 }
 0x5d0   : > { %v3181_v62 = vpop.f32.mrf.mxu1  ;;  %v3275_v9 = vpop.f32.mrf.mxu0 }
 0x5d1   : > { %v3182_v49 = vadd.f32 %v3181_v62, %v3100_v34  ;;  %v3276_v59 = vadd.f32 %v3275_v9, %v3180_v13 }
 0x5d2   : > { %v3277_v46 = vpop.f32.mrf.mxu0 }
 0x5d3   : > { %v3278_v39 = vadd.f32 %v3277_v46, %v3182_v49 }
 0x5d9   : > { %v3355_v40 = vpop.f32.mrf.mxu1  ;;  %v3435_v36 = vpop.f32.mrf.mxu0 }
 0x5da   : > { %v3356_v38 = vadd.f32 %v3355_v40, %v3276_v59  ;;  %v3436_v33 = vadd.f32 %v3435_v36, %v2806_v28 }
 0x5db   : > { %v3357_v48 = vpop.f32.mrf.mxu1  ;;  %v5401_v21 = vpop.f32.mrf.mxu0 }
 0x5dc   : > { %v3845_v53 = vmax.f32 %v3356_v38, 0.0  ;;  %v3358_v12 = vadd.f32 %v3357_v48, %v3278_v39 }
 0x5de   : > { %v3851_v6 = vmul.f32 0.70710677, %v3845_v53  ;;  %v3846_v14 = vmax.f32 %v3358_v12, 0.0  ;;  %v3848_v47 = vmul.f32 0.5, %v3845_v53 }
 0x5e0   : > { %5567 = verf.f32 %v3851_v6  ;;  %v3852_v18 = vmul.f32 0.70710677, %v3846_v14  ;;  %v3849_v41 = vmul.f32 0.5, %v3846_v14 }
 0x5e2   : > { %5569 = verf.f32 %v3852_v18  ;;  %v3526_v29 = vpop.f32.mrf.mxu1  ;;  %v5136_v18 = vld [vmem:[%s7087_s2 + $0xc] sm:$0x7] }
 0x5e3   : > { %v3527_v44 = vadd.f32 %v3526_v29, %v3436_v33 }
 0x5e4   : > { %v3606_v30 = vpop.f32.mrf.mxu0  ;;  %v5412_v11 = vpop.f32.mrf.mxu1 }
 0x5e5   : > { %v3607_v16 = vadd.f32 %v3606_v30, %v3527_v44 }
 0x5e6   : > { %v5423_v35 = vpop.f32.mrf.mxu0 }
 0x5ec   : > { %v3683_v8 = vpop.f32.mrf.mxu1 }
 0x5ed   : > { %v5568_v0 = vpop.eup %5567  ;;  %v3684_v4 = vadd.f32 %v3683_v8, %v3607_v16 }
 0x5ee   : > { %v3857_v42 = vadd.f32 1.0, %v5568_v0  ;;  %v3766_v27 = vpop.f32.mrf.mxu0  ;;  %v5434_v19 = vpop.f32.mrf.mxu1 }
 0x5ef   : > { %v5570_v22 = vpop.eup %5569  ;;  %v3767_v15 = vadd.f32 %v3766_v27, %v3684_v4 }
 0x5f0   : > { %v3860_v32 = vmul.f32 %v3857_v42, %v3848_v47  ;;  %v3858_v50 = vadd.f32 1.0, %v5570_v22  ;;  %v5445_v63 = vpop.f32.mrf.mxu0 }
 0x5f1   : > { %v5135_v63 = vld [vmem:[%s7086_s1 + $0xc] sm:$0x7] }
 0x5f2   : > { %v3861_v3 = vmul.f32 %v3858_v50, %v3849_v41  ;;  %v3863_v26 = vmul.f32 %v3860_v32, %v5980_v5 }
 0x5f4   : > { %v3864_v31 = vmul.f32 %v3861_v3, %v5982_v10 }
 0x5f5   : > { %v3841_v52 = vpop.f32.mrf.mxu1 }
 0x5f6   : > { %v3842_v1 = vadd.f32 %v3841_v52, %v3767_v15  ;;  %v3869_v20 = vcombine.low %v3863_v26, %v3864_v31 }
 0x5f7   : > { %v5456_v2 = vpop.f32.mrf.mxu1 }
 0x5f8   : > { %v3847_v24 = vmax.f32 %v3842_v1, 0.0  ;;  %3870 = vrot.lane.b32.xlu0 %v3869_v20, %s5592_s9 }
 0x5fa   : > { %v3853_v45 = vmul.f32 0.70710677, %v3847_v24  ;;  %v3850_v43 = vmul.f32 0.5, %v3847_v24 }
 0x5fc   : > { %5571 = verf.f32 %v3853_v45 }
 0x609   : > { %v5572_v28 = vpop.eup %5571 }
 0x60a   : > { %v3859_v17 = vadd.f32 1.0, %v5572_v28 }
 0x60c   : > { %v3862_v37 = vmul.f32 %v3859_v17, %v3850_v43 }
 0x60e   : > { %v3865_v51 = vmul.f32 %v3862_v37, %v5987_v56 }
 0x610   : > { %3872 = vrot.lane.b32.xlu1 %v3865_v51, %s5592_s9 }
 0x66a   : > { %v3871_v5 = vpop.permute.xlu0 %3870 }
 0x66b   : > { %v3874_v54 = vrot.slane %v3871_v5, 4 }
 0x66d   : > { %v3875_v10 = vsel %vm1442_vm14, %v3874_v54, %v3871_v5 }
 0x66e   : > { %3879 = vst.msk [vmem:[#allocation2] sm:$0x77] %vm5991_vm6, %v3875_v10  ;;  %vm7129_vm6 = vcmask 706560  }
 0x675   : > { %v6724_v55 = vld [vmem:[#allocation2] sm:$0x77] }
 0x676   : > { %3933 = vrot.lane.b32.xlu1 %v6724_v55, %s5587_s27  ;;  %3984 = vrot.lane.b32.xlu0 %v6724_v55, %s5581_s21  ;;  %v3942_v57 = vrot.slane %v6724_v55, 1  ;;  %v6733_v56 = vcombine.high %v6724_v55, %v6724_v55  ;;  %v3901_v61 = vrot.slane %v6724_v55, 2  ;;  %v3956_v58 = vrot.slane %v6724_v55, 6 }
 0x677   : > { %v3970_v60 = vrot.slane %v6724_v55, 3  ;;  %v3915_v7 = vrot.slane %v6724_v55, 7  ;;  %v3929_v9 = vcombine.low %v6724_v55, %v6724_v55  ;;  %v3887_v14 = vrot.slane %v6724_v55, 5 }
 0x678   : > { %v3902_v34 = vrot.slane %v6733_v56, 2  ;;  %v3943_v13 = vrot.slane %v6733_v56, 1  ;;  %v3916_v49 = vrot.slane %v6733_v56, 7  ;;  %v3957_v46 = vrot.slane %v6733_v56, 6 }
 0x679   : > { %v3971_v59 = vrot.slane %v6733_v56, 3  ;;  %v3888_v21 = vrot.slane %v6733_v56, 5 }
 0x67a   : > { %3945 = vrot.lane.b32.xlu1 %v3942_v57, %s5582_s22  ;;  %3986 = vrot.lane.b32.xlu0 %v6733_v56, %s5581_s21 }
 0x67e   : > { %3904 = vrot.lane.b32.xlu1 %v3901_v61, %s5584_s24  ;;  %3959 = vrot.lane.b32.xlu0 %v3956_v58, %s5583_s23 }
 0x682   : > { %v3873_v25 = vpop.permute.xlu1 %3872  ;;  %3973 = vrot.lane.b32.xlu1 %v3970_v60, %s5586_s26  ;;  %3918 = vrot.lane.b32.xlu0 %v3915_v7, %s5585_s25 }
 0x683   : > { %v3876_v62 = vsel %vm1442_vm14, %v3874_v54, %v3873_v25  ;;  %vm7130_vm14 = vcmask 220160  }
 0x684   : > { %3880 = vst.msk [vmem:[#allocation2 + $0x8] sm:$0x7] %vm7129_vm6, %v3876_v62  ;;  %v4023_v2 = vsel %vm7130_vm14, %v5135_v63, 0  ;;  %vm7136_vm6 = vmmov %vm7133_vm11  ;;  %vm7141_vm14 = vcmask 1045504  }
 0x685   : > { %v6822_v5 = vand.u32 4294901760, %v4023_v2 }
 0x686   : > { %3931 = vrot.lane.b32.xlu0 %v3929_v9, %s5587_s27  ;;  %3906 = vrot.lane.b32.xlu1 %v3902_v34, %s5584_s24 }
 0x687   : > { %v6840_v62 = vsub.f32 %v4023_v2, %v6822_v5 }
 0x68a   : > { %3947 = vrot.lane.b32.xlu0 %v3943_v13, %s5582_s22  ;;  %3920 = vrot.lane.b32.xlu1 %v3916_v49, %s5585_s25 }
 0x68b   : > { %v6759_v40 = vld [vmem:[#allocation2 + $0x8] sm:$0x7] }
 0x68c   : > { %v3903_v39 = vrot.slane %v6759_v40, 2  ;;  %v3917_v38 = vrot.slane %v6759_v40, 7  ;;  %v3944_v36 = vrot.slane %v6759_v40, 1  ;;  %v3972_v48 = vrot.slane %v6759_v40, 3 }
 0x68d   : > { %v3958_v53 = vrot.slane %v6759_v40, 6  ;;  %v3930_v12 = vcombine.low %v6759_v40, %v6759_v40  ;;  %v3889_v6 = vrot.slane %v6759_v40, 5 }
 0x68e   : > { %3961 = vrot.lane.b32.xlu0 %v3957_v46, %s5583_s23  ;;  %3975 = vrot.lane.b32.xlu1 %v3971_v59, %s5586_s26 }
 0x692   : > { %3908 = vrot.lane.b32.xlu0 %v3903_v39, %s5584_s24  ;;  %3988 = vrot.lane.b32.xlu1 %v6759_v40, %s5581_s21 }
 0x696   : > { %3922 = vrot.lane.b32.xlu0 %v3917_v38, %s5585_s25  ;;  %3949 = vrot.lane.b32.xlu1 %v3944_v36, %s5582_s22 }
 0x69a   : > { %3977 = vrot.lane.b32.xlu0 %v3972_v48, %s5586_s26  ;;  %3963 = vrot.lane.b32.xlu1 %v3958_v53, %s5583_s23 }
 0x69e   : > { %3935 = vrot.lane.b32.xlu0 %v3930_v12, %s5587_s27  ;;  %3892 = vrot.lane.b32.xlu1 %v3888_v21, %s5589_s28  ;;  %s197_s27 = scalar_lea.vmem %s7089_s4, %s5523_s17 }
 0x6a2   : > { %3894 = vrot.lane.b32.xlu0 %v3889_v6, %s5589_s28  ;;  %3890 = vrot.lane.b32.xlu1 %v3887_v14, %s5589_s28  ;;  %v6868_v6 = vand.u32 4294901760, %v6840_v62 }
 0x6a6   : > { %4019 = vperm.xlu0 %5544, %v5136_v18  }
 0x6e8   : > { %v6787_v29 = vpop.permute.xlu1 %3933  ;;  %v3985_v30 = vpop.permute.xlu0 %3984 }
 0x6ec   : > { %v3946_v11 = vpop.permute.xlu1 %3945  ;;  %v3987_v35 = vpop.permute.xlu0 %3986 }
 0x6ed   : > { %v3990_v16 = vsel %vm320_vm1, %v3985_v30, %v3987_v35 }
 0x6ee   : > { %v4025_v19 = vsel %vm323_vm2, %v3990_v16, 0 }
 0x6ef   : > { %v6791_v32 = vand.u32 4294901760, %v4025_v19 }
 0x6f0   : > { %v3905_v33 = vpop.permute.xlu1 %3904  ;;  %v3960_v44 = vpop.permute.xlu0 %3959 }
 0x6f1   : > { %v6804_v31 = vsub.f32 %v4025_v19, %v6791_v32 }
 0x6f3   : > { %v4147_v54 = vand.u32 4294901760, %v6804_v31 }
 0x6f4   : > { %v3974_v0 = vpop.permute.xlu1 %3973  ;;  %v3919_v8 = vpop.permute.xlu0 %3918 }
 0x6f5   : > { %v4148_v13 = vsub.f32 %v6804_v31, %v4147_v54 }
 0x6f8   : > { %v3932_v47 = vpop.permute.xlu0 %3931  ;;  %v3907_v42 = vpop.permute.xlu1 %3906 }
 0x6f9   : > { %v6798_v3 = vsel %vm234_vm10, %v3905_v33, %v3907_v42  ;;  %v3937_v24 = vsel %vm7131_vm5, %v3932_v47, %v6787_v29 }
 0x6fc   : > { %v3948_v22 = vpop.permute.xlu0 %3947  ;;  %v3921_v27 = vpop.permute.xlu1 %3920 }
 0x6fd   : > { %v3924_v41 = vsel %vm249_vm9, %v3919_v8, %v3921_v27  ;;  %v3951_v52 = vsel %vm278_vm4, %v3946_v11, %v3948_v22 }
 0x6fe   : > { %v3998_v26 = vsel %vm331_vm13, %v6798_v3, %v3924_v41 }
 0x6ff   : > { %v4001_v17 = vsel %vm335_vm12, %v3998_v26, %v3937_v24 }
 0x700   : > { %v3962_v50 = vpop.permute.xlu0 %3961  ;;  %v3976_v4 = vpop.permute.xlu1 %3975 }
 0x701   : > { %v3965_v15 = vsel %vm293_vm3, %v3960_v44, %v3962_v50  ;;  %v3979_v28 = vsel %vm7132_vm15, %v3974_v0, %v3976_v4 }
 0x702   : > { %v4007_v45 = vsel %vm343_vm8, %v3951_v52, %v3965_v15 }
 0x703   : > { %v4010_v10 = vsel %vm7133_vm11, %v4007_v45, %v3979_v28 }
 0x704   : > { %v6807_v1 = vpop.permute.xlu0 %3908  ;;  %v6809_v20 = vpop.permute.xlu1 %3988  ;;  %v6836_v7 = vand.u32 4294901760, %v4010_v10 }
 0x705   : > { %v3991_v43 = vsel %vm320_vm1, %v3987_v35, %v6809_v20  ;;  %vm7134_vm1 = vcmask 1046528   ;;  %v3911_v14 = vsel %vm234_vm10, %v3907_v42, %v6807_v1  ;;  %v4149_v35 = vand.u32 4294901760, %v4148_v13 }
 0x706   : > { %v4027_v37 = vsel %vm323_vm2, %v3991_v43, 0  ;;  %v4004_v60 = vsel %vm7134_vm1, %v4001_v17, %v3951_v52  ;;  %v6864_v53 = vsub.f32 %v4010_v10, %v6836_v7 }
 0x707   : > { %v6820_v51 = vand.u32 4294901760, %v4027_v37  ;;  %v6849_v49 = vand.u32 4294901760, %v4004_v60 }
 0x708   : > { %v6826_v57 = vpop.permute.xlu0 %3922  ;;  %v6828_v61 = vpop.permute.xlu1 %3949  ;;  %v4159_v42 = vand.u32 4294901760, %v6864_v53 }
 0x709   : > { %v6831_v58 = vsub.f32 %v4027_v37, %v6820_v51  ;;  %4056 = vmatprep.subr.mxu0 %v6820_v51  ;;  %v3952_v46 = vsel %vm278_vm4, %v3948_v22, %v6828_v61  ;;  %v3925_v36 = vsel %vm249_vm9, %v3921_v27, %v6826_v57  ;;  %v6881_v0 = vsub.f32 %v4004_v60, %v6849_v49  ;;  %vm7138_vm4 = vmmov %vm7134_vm1 }
 0x70a   : > { %4058 = vmatpush1.msra.mxu0 %v6791_v32  ;;  %v3999_v33 = vsel %vm331_vm13, %v3911_v14, %v3925_v36  ;;  %vm7139_vm9 = vcmask 1039360   ;;  %v4160_v45 = vsub.f32 %v6864_v53, %v4159_v42 }
 0x70b   : > { %v4141_v25 = vand.u32 4294901760, %v6831_v58  ;;  %vm7140_vm10 = vmmov %vm7139_vm9  ;;  %v4171_v63 = vand.u32 4294901760, %v6881_v0 }
 0x70c   : > { %v6842_v9 = vpop.permute.xlu0 %3977  ;;  %v6844_v34 = vpop.permute.xlu1 %3963 }
 0x70d   : > { %v3980_v59 = vsel %vm7135_vm7, %v3976_v4, %v6842_v9  ;;  %v3966_v39 = vsel %vm293_vm3, %v3962_v50, %v6844_v34  ;;  %v4142_v38 = vsub.f32 %v6831_v58, %v4141_v25  ;;  %vm7137_vm3 = vmmov %vm7131_vm5 }
 0x70e   : > { %v4008_v48 = vsel %vm343_vm8, %v3952_v46, %v3966_v39  ;;  %vm7142_vm5 = vmmov %vm7141_vm14 }
 0x70f   : > { %v4011_v12 = vsel %vm7136_vm6, %v4008_v48, %v3980_v59  ;;  %v4143_v21 = vand.u32 4294901760, %v4142_v38 }
 0x710   : > { %v6872_v18 = vand.u32 4294901760, %v4011_v12  ;;  %v6874_v30 = vpop.permute.xlu0 %3935  ;;  %v3893_v11 = vpop.permute.xlu1 %3892 }
 0x711   : > { %v3938_v44 = vsel %vm7137_vm3, %v6787_v29, %v6874_v30  ;;  %4144 = vmatprep.subr.mxu1 %v4143_v21  ;;  %v4107_v29 = vsub.f32 %v6840_v62, %v6868_v6 }
 0x712   : > { %v6884_v8 = vsub.f32 %v4011_v12, %v6872_v18  ;;  %v4002_v47 = vsel %vm335_vm12, %v3999_v33, %v3938_v44  ;;  %4060 = vmatprep.subr.mxu0 %v6872_v18  ;;  %4150 = vmatpush1.msra.mxu1 %v4149_v35  ;;  %v4029_v35 = vsel %vm323_vm2, %v6809_v20, 0  ;;  %v4000_v33 = vsel %vm331_vm13, %v6807_v1, %v6826_v57 }
 0x713   : > { %v4005_v16 = vsel %vm7138_vm4, %v4002_v47, %v3952_v46  ;;  %4062 = vmatpush1.msra.mxu0 %v6836_v7  ;;  %v6917_v28 = vand.u32 4294901760, %v4107_v29  ;;  %v4161_v46 = vand.u32 4294901760, %v4160_v45  ;;  %v4003_v44 = vsel %vm335_vm12, %v4000_v33, %v6874_v30  ;;  %vm7144_vm12 = vmmov %vm7134_vm1 }
 0x714   : > { %v6893_v22 = vand.u32 4294901760, %v4005_v16  ;;  %v6895_v27 = vpop.permute.xlu0 %3894  ;;  %v3891_v19 = vpop.permute.xlu1 %3890  ;;  %v4153_v41 = vand.u32 4294901760, %v6884_v8  ;;  %v6964_v20 = vand.u32 4294901760, %v4029_v35  ;;  %vm5067_vm13 = vcmask 550912  }
 0x715   : > { %v3897_v50 = vsel %vm7139_vm9, %v3893_v11, %v6895_v27  ;;  %v3896_v4 = vsel %vm7140_vm10, %v3891_v19, %v3893_v11  ;;  %v4009_v11 = vsel %vm343_vm8, %v6828_v61, %v6844_v34  ;;  %vm7143_vm8 = vmmov %vm7136_vm6  ;;  %v3994_v57 = vsel %vm323_vm2, %v6759_v40, %v6895_v27 }
 0x716   : > { %v6903_v15 = vsub.f32 %v4005_v16, %v6893_v22  ;;  %v3993_v26 = vsel %vm323_vm2, %v6733_v56, %v3897_v50  ;;  %v3992_v52 = vsel %vm323_vm2, %v6724_v55, %v3896_v4  ;;  %4064 = vmatprep.subr.mxu0 %v6893_v22  ;;  %v4154_v55 = vsub.f32 %v6884_v8, %v4153_v41  ;;  %vm7145_vm2 = vmmov %vm7142_vm5 }
 0x717   : > { %v3996_v2 = vsel %vm7141_vm14, %v3993_v26, %v3911_v14  ;;  %v3995_v24 = vsel %vm7142_vm5, %v3992_v52, %v6798_v3  ;;  %4066 = vmatpush1.msra.mxu0 %v6849_v49  ;;  %v4172_v3 = vsub.f32 %v6881_v0, %v4171_v63  ;;  %v4012_v34 = vsel %vm7143_vm8, %v4009_v11, %v6842_v9 }
 0x718   : > { %v6919_v43 = vand.u32 4294901760, %v3996_v2  ;;  %v6921_v56 = vand.u32 4294901760, %v3995_v24  ;;  %v4165_v17 = vand.u32 4294901760, %v6903_v15  ;;  %v4155_v60 = vand.u32 4294901760, %v4154_v55 }
 0x719   : > { %v4173_v36 = vand.u32 4294901760, %v4172_v3  ;;  %v3997_v40 = vsel %vm7145_vm2, %v3994_v57, %v6807_v1 }
 0x71a   : > { %v4176_v37 = vsub.f32 %v3996_v2, %v6919_v43  ;;  %v4182_v10 = vsub.f32 %v3995_v24, %v6921_v56  ;;  %4068 = vmatprep.subr.mxu0 %v6919_v43  ;;  %v4166_v13 = vsub.f32 %v6903_v15, %v4165_v17  ;;  %4156 = vmatprep.subr.mxu1 %v4155_v60  ;;  %v6995_v1 = vand.u32 4294901760, %v3997_v40 }
 0x71b   : > { %4070 = vmatpush1.msra.mxu0 %v6921_v56  ;;  %4162 = vmatpush1.msra.mxu1 %v4161_v46 }
 0x71c   : > { %4109 = vmatmul.mubr.f32.vlgmr.msra.gmra.mxu0 %v6917_v28  ;;  %v4167_v59 = vand.u32 4294901760, %v4166_v13  ;;  %v4177_v39 = vand.u32 4294901760, %v4176_v37  ;;  %v4183_v38 = vand.u32 4294901760, %v4182_v10  ;;  %4253 = vmatprep.subr.mxu0 %v6831_v58  ;;  %v4006_v58 = vsel %vm7144_vm12, %v4003_v44, %v6828_v61 }
 0x71d   : > { %4256 = vmatpush1.msra.mxu0 %v6804_v31  ;;  %4307 = vmatprep.mubr.f32.mxu0 %v5588_v23  ;;  %v6977_v31 = vand.u32 4294901760, %v4012_v34  ;;  %v6988_v61 = vand.u32 4294901760, %v4006_v58 }
 0x71e   : > { %4168 = vmatprep.subr.mxu1 %v4167_v59  ;;  %v4178_v48 = vsub.f32 %v4176_v37, %v4177_v39  ;;  %v4184_v12 = vsub.f32 %v4182_v10, %v4183_v38  ;;  %4259 = vmatprep.subr.mxu0 %v6884_v8 }
 0x71f   : > { %4174 = vmatpush1.msra.mxu1 %v4173_v36  ;;  %4262 = vmatpush1.msra.mxu0 %v6864_v53  ;;  %v7003_v53 = vsub.f32 %v4006_v58, %v6988_v61 }
 0x720   : > { %v4179_v21 = vand.u32 4294901760, %v4178_v48  ;;  %v4185_v14 = vand.u32 4294901760, %v4184_v12  ;;  %4265 = vmatprep.subr.mxu0 %v6903_v15 }
 0x721   : > { %4268 = vmatpush1.msra.mxu0 %v6881_v0  ;;  %v4700_v0 = vsub.f32 %v3997_v40, %v6995_v1 }
 0x722   : > { %4180 = vmatprep.subr.mxu1 %v4179_v21  ;;  %4271 = vmatprep.subr.mxu0 %v4176_v37 }
 0x723   : > { %4186 = vmatpush1.msra.mxu1 %v4185_v14  ;;  %4274 = vmatpush1.msra.mxu0 %v4182_v10 }
 0x724   : > { %4221 = vmatmul.mubr.f32.vlgmr.msra.gmra.mxu1 %v6822_v5  ;;  %4341 = vmatprep.subr.mxu1 %v6820_v51 }
 0x725   : > { %4425 = vmatprep.subr.mxu0 %v4141_v25  ;;  %4310 = vmatmul.mubr.f32.vlgmr.msra.gmra.mxu0 %v6840_v62  ;;  %v6993_v25 = vsub.f32 %v4012_v34, %v6977_v31 }
 0x726   : > { %4343 = vmatpush1.msra.mxu1 %v6791_v32  ;;  %4429 = vmatpush1.msra.mxu0 %v4147_v54  ;;  %v6986_v54 = vsub.f32 %v4029_v35, %v6964_v20 }
 0x727   : > { %4345 = vmatprep.subr.mxu1 %v6872_v18  ;;  %4433 = vmatprep.subr.mxu0 %v4153_v41  ;;  %v4687_v30 = vand.u32 4294901760, %v6993_v25 }
 0x728   : > { %4347 = vmatpush1.msra.mxu1 %v6836_v7  ;;  %4437 = vmatpush1.msra.mxu0 %v4159_v42  ;;  %v4680_v9 = vand.u32 4294901760, %v6986_v54 }
 0x729   : > { %4349 = vmatprep.subr.mxu1 %v6893_v22  ;;  %4441 = vmatprep.subr.mxu0 %v4165_v17 }
 0x72a   : > { %4351 = vmatpush1.msra.mxu1 %v6849_v49  ;;  %4445 = vmatpush1.msra.mxu0 %v4171_v63 }
 0x72b   : > { %4353 = vmatprep.subr.mxu1 %v6919_v43  ;;  %4449 = vmatprep.subr.mxu0 %v4177_v39 }
 0x72c   : > { %4355 = vmatpush1.msra.mxu1 %v6921_v56  ;;  %4388 = vmatprep.mubr.f32.mxu1 %v5588_v23 }
 0x72d   : > { %4453 = vmatpush1.msra.mxu0 %v4183_v38  ;;  %4392 = vmatmul.mubr.f32.vlgmr.msra.gmra.mxu1 %v6868_v6 }
 0x72e   : > { %4486 = vmatprep.mubr.f32.mxu0 %v5588_v23  ;;  %4519 = vmatprep.subr.mxu1 %v6820_v51  ;;  %v4681_v51 = vsub.f32 %v6986_v54, %v4680_v9 }
 0x72f   : > { %5457 = vmatprep.subr.mxu0 %v5588_v23  ;;  %4488 = vmatmul.mubr.f32.vlgmr.msra.gmra.mxu0 %v6822_v5 }
 0x730   : > { %4521 = vmatpush1.msra.mxu1 %v6791_v32  ;;  %5458 = vmatpush3.msra.mxu0 %v6964_v20  ;;  %v4694_v32 = vand.u32 4294901760, %v7003_v53 }
 0x731   : > { %4523 = vmatprep.subr.mxu1 %v6872_v18  ;;  %5459 = vmatprep.subr.mxu0 %v5588_v23  ;;  %v4701_v18 = vand.u32 4294901760, %v4700_v0 }
 0x732   : > { %4525 = vmatpush1.msra.mxu1 %v6836_v7  ;;  %5460 = vmatpush3.msra.mxu0 %v6977_v31  ;;  %v4688_v7 = vsub.f32 %v6993_v25, %v4687_v30  ;;  %v4695_v8 = vsub.f32 %v7003_v53, %v4694_v32 }
 0x733   : > { %4527 = vmatprep.subr.mxu1 %v6893_v22  ;;  %5461 = vmatprep.subr.mxu0 %v5588_v23  ;;  %v4702_v42 = vsub.f32 %v4700_v0, %v4701_v18  ;;  %v4020_v22 = vpop.permute.xlu0 %4019 }
 0x734   : > { %4529 = vmatpush1.msra.mxu1 %v6849_v49  ;;  %5462 = vmatpush3.msra.mxu0 %v6988_v61  ;;  %v4682_v49 = vand.u32 4294901760, %v4681_v51  ;;  %v4689_v47 = vand.u32 4294901760, %v4688_v7  ;;  %v4696_v16 = vand.u32 4294901760, %v4695_v8 }
 0x735   : > { %4531 = vmatprep.subr.mxu1 %v6919_v43  ;;  %5463 = vmatprep.subr.mxu0 %v5588_v23  ;;  %v4703_v29 = vand.u32 4294901760, %v4702_v42 }
 0x736   : > { %4533 = vmatpush1.msra.mxu1 %v6921_v56  ;;  %4566 = vmatprep.mubr.f32.mxu1 %v5588_v23 }
 0x737   : > { %5464 = vmatpush3.msra.mxu0 %v6995_v1  ;;  %5465 = vmatprep.mubr.msk.f32.mxu0 %vm7113_vm0, %v5588_v23 }
 0x738   : > { %4568 = vmatmul.mubr.f32.vlgmr.msra.gmra.mxu1 %v6822_v5  ;;  %5466 = vmatmul.mubr.f32.vlgmr.msra.gmra.mxu0 %v6917_v28 }
 0x739   : > { %5468 = vmatprep.subr.mxu1 %v5588_v23  ;;  %5479 = vmatprep.subr.mxu0 %v5588_v23 }
 0x73a   : > { %5469 = vmatpush3.msra.mxu1 %v4682_v49  ;;  %5480 = vmatpush3.msra.mxu0 %v6986_v54 }
 0x73b   : > { %5470 = vmatprep.subr.mxu1 %v5588_v23  ;;  %5481 = vmatprep.subr.mxu0 %v5588_v23 }
 0x73c   : > { %5471 = vmatpush3.msra.mxu1 %v4689_v47  ;;  %5482 = vmatpush3.msra.mxu0 %v6993_v25 }
 0x73d   : > { %5472 = vmatprep.subr.mxu1 %v5588_v23  ;;  %5483 = vmatprep.subr.mxu0 %v5588_v23 }
 0x73e   : > { %5473 = vmatpush3.msra.mxu1 %v4696_v16  ;;  %5484 = vmatpush3.msra.mxu0 %v7003_v53 }
 0x73f   : > { %5474 = vmatprep.subr.mxu1 %v5588_v23  ;;  %5485 = vmatprep.subr.mxu0 %v5588_v23 }
 0x740   : > { %5475 = vmatpush3.msra.mxu1 %v4703_v29  ;;  %5476 = vmatprep.mubr.msk.f32.mxu1 %vm7113_vm0, %v5588_v23 }
 0x741   : > { %5486 = vmatpush3.msra.mxu0 %v4700_v0  ;;  %5477 = vmatmul.mubr.f32.vlgmr.msra.gmra.mxu1 %v6822_v5 }
 0x742   : > { %5487 = vmatprep.mubr.msk.f32.mxu0 %vm7113_vm0, %v5588_v23  ;;  %5490 = vmatprep.subr.mxu1 %v5588_v23 }
 0x743   : > { %5501 = vmatprep.subr.mxu0 %v5588_v23  ;;  %5488 = vmatmul.mubr.f32.vlgmr.msra.gmra.mxu0 %v6840_v62 }
 0x744   : > { %5491 = vmatpush3.msra.mxu1 %v6964_v20  ;;  %5502 = vmatpush3.msra.mxu0 %v4680_v9 }
 0x745   : > { %5492 = vmatprep.subr.mxu1 %v5588_v23  ;;  %5503 = vmatprep.subr.mxu0 %v5588_v23 }
 0x746   : > { %5493 = vmatpush3.msra.mxu1 %v6977_v31  ;;  %5504 = vmatpush3.msra.mxu0 %v4687_v30 }
 0x747   : > { %5494 = vmatprep.subr.mxu1 %v5588_v23  ;;  %5505 = vmatprep.subr.mxu0 %v5588_v23 }
 0x748   : > { %5495 = vmatpush3.msra.mxu1 %v6988_v61  ;;  %5506 = vmatpush3.msra.mxu0 %v4694_v32 }
 0x749   : > { %5496 = vmatprep.subr.mxu1 %v5588_v23  ;;  %5507 = vmatprep.subr.mxu0 %v5588_v23 }
 0x74a   : > { %5497 = vmatpush3.msra.mxu1 %v6995_v1  ;;  %5498 = vmatprep.mubr.msk.f32.mxu1 %vm7113_vm0, %v5588_v23 }
 0x74b   : > { %5508 = vmatpush3.msra.mxu0 %v4701_v18  ;;  %5499 = vmatmul.mubr.f32.vlgmr.msra.gmra.mxu1 %v6868_v6 }
 0x74c   : > { %5512 = vmatprep.subr.mxu1 %v5588_v23  ;;  %5509 = vmatprep.mubr.msk.f32.mxu0 %vm7113_vm0, %v5588_v23 }
 0x74d   : > { %5513 = vmatpush3.msra.mxu1 %v6964_v20  ;;  %5510 = vmatmul.mubr.f32.vlgmr.msra.gmra.mxu0 %v6822_v5 }
 0x74e   : > { %5514 = vmatprep.subr.mxu1 %v5588_v23  ;;  %5520 = vmatprep.mubr.msk.f32.mxu1 %vm7113_vm0, %v5588_v23 }
 0x74f   : > { %5515 = vmatpush3.msra.mxu1 %v6977_v31 }
 0x750   : > { %5516 = vmatprep.subr.mxu1 %v5588_v23 }
 0x751   : > { %5517 = vmatpush3.msra.mxu1 %v6988_v61 }
 0x752   : > { %5518 = vmatprep.subr.mxu1 %v5588_v23 }
 0x753   : > { %5519 = vmatpush3.msra.mxu1 %v6995_v1 }
 0x754   : > { %5521 = vmatmul.mubr.f32.vlgmr.msra.gmra.mxu1 %v6822_v5 }
 0x7dc   : > { %v4110_v62 = vpop.f32.mrf.mxu0 }
 0x7dd   : > { %v4111_v19 = vadd.f32 %v4110_v62, %v4020_v22 }
 0x7de   : > { %v4112_v27 = vpop.f32.mrf.mxu0 }
 0x7df   : > { %v4113_v4 = vadd.f32 %v4112_v27, %v4020_v22 }
 0x7e4   : > { %v4222_v6 = vpop.f32.mrf.mxu1 }
 0x7e5   : > { %v4311_v50 = vpop.f32.mrf.mxu0  ;;  %v4223_v63 = vadd.f32 %v4222_v6, %v4111_v19 }
 0x7e6   : > { %v4224_v41 = vpop.f32.mrf.mxu1 }
 0x7e7   : > { %v4225_v26 = vadd.f32 %v4224_v41, %v4113_v4  ;;  %v4313_v52 = vpop.f32.mrf.mxu0  ;;  %v4312_v2 = vadd.f32 %v4311_v50, %v4223_v63 }
 0x7e9   : > { %v4314_v45 = vadd.f32 %v4313_v52, %v4225_v26 }
 0x7ed   : > { %v4393_v15 = vpop.f32.mrf.mxu1 }
 0x7ee   : > { %v4394_v28 = vadd.f32 %v4393_v15, %v4312_v2 }
 0x7ef   : > { %v4395_v24 = vpop.f32.mrf.mxu1  ;;  %v4489_v23 = vpop.f32.mrf.mxu0 }
 0x7f0   : > { %v4396_v43 = vadd.f32 %v4395_v24, %v4314_v45  ;;  %v4490_v56 = vadd.f32 %v4489_v23, %v4394_v28 }
 0x7f1   : > { %v4491_v5 = vpop.f32.mrf.mxu0 }
 0x7f2   : > { %v4492_v17 = vadd.f32 %v4491_v5, %v4396_v43 }
 0x7f8   : > { %v4569_v55 = vpop.f32.mrf.mxu1  ;;  %v4649_v37 = vpop.f32.mrf.mxu0 }
 0x7f9   : > { %v4570_v3 = vadd.f32 %v4569_v55, %v4490_v56  ;;  %v4650_v21 = vadd.f32 %v4649_v37, %v4020_v22 }
 0x7fa   : > { %v4571_v10 = vpop.f32.mrf.mxu1  ;;  %v5467_v13 = vpop.f32.mrf.mxu0 }
 0x7fb   : > { %v4572_v60 = vadd.f32 %v4571_v10, %v4492_v17  ;;  %v5059_v46 = vmax.f32 %v4570_v3, 0.0 }
 0x7fd   : > { %v5060_v59 = vmax.f32 %v4572_v60, 0.0 }
 0x7ff   : > { %v5064_v39 = vcombine.low %v5059_v46, %v5060_v59 }
 0x801   : > { %5066 = vst [vmem:[%s197_s27] sm:$0x77] %v5064_v39  ;;  %v4740_v38 = vpop.f32.mrf.mxu1 }
 0x802   : > { %v4741_v14 = vadd.f32 %v4740_v38, %v4650_v21 }
 0x803   : > { %v5478_v36 = vpop.f32.mrf.mxu1  ;;  %v4820_v48 = vpop.f32.mrf.mxu0 }
 0x804   : > { %v4821_v35 = vadd.f32 %v4820_v48, %v4741_v14 }
 0x805   : > { %v5489_v12 = vpop.f32.mrf.mxu0 }
 0x80b   : > { %v4897_v11 = vpop.f32.mrf.mxu1 }
 0x80c   : > { %v4898_v34 = vadd.f32 %v4897_v11, %v4821_v35 }
 0x80d   : > { %v5500_v33 = vpop.f32.mrf.mxu1  ;;  %v4980_v44 = vpop.f32.mrf.mxu0 }
 0x80e   : > { %v4981_v57 = vadd.f32 %v4980_v44, %v4898_v34 }
 0x80f   : > { %v5511_v20 = vpop.f32.mrf.mxu0 }
 0x814   : > { %v5055_v58 = vpop.f32.mrf.mxu1 }
 0x815   : > { %v5056_v31 = vadd.f32 %v5055_v58, %v4981_v57 }
 0x816   : > { %v5522_v40 = vpop.f32.mrf.mxu1 }
 0x817   : > { %v5061_v54 = vmax.f32 %v5056_v31, 0.0 }
 0x819   : > { %5068 = vst.msk [vmem:[%s197_s27 + $0x8] sm:$0x7] %vm5067_vm13, %v5061_v54 }
 0x81a PF: > { %s14_s15 = sadd.s32 1, %s5579_s15  }
 0x81b   : > { %p11_p4 = scmp.ge.s32.totalorder %s14_s15, 4  }
 0x81d   :  { %13 = sbr.rel (!%p11_p4) target bundleno = 1 (0x1), region = 72 }

</bundles_post_ra>
